<compile_context>
chip_gen: v6e
topology: v6e:2x2x1
jax: 0.10.0
libtpu: 0.0.40
codegen_flags: <defaults>
</compile_context>

<pallas_src>
import jax
import jax.numpy as jnp
from jax import lax
from jax.experimental import pallas as pl
from jax.experimental.pallas import tpu as pltpu


# ----------------------------------------------------------------------------
# Fused attention kernel: one grid step == one batch element, all heads.
# ----------------------------------------------------------------------------
def _make_fused_attn_kernel(num_heads, head_dim):
    H, D = num_heads, head_dim

    def kernel(x_ref, wqkv_ref, wproj_ref, bproj_ref, o_ref, qkv_ref, acc_ref):
        # x_ref:     (1, N, C)      one batch element
        # wqkv_ref:  (C, 3C) bf16   pre-transposed qkv weight (scale folded into q cols)
        # wproj_ref: (C, C)  bf16   pre-transposed proj weight
        # bproj_ref: (1, C)  f32    proj bias
        # o_ref:     (1, N, C)      output block
        # qkv_ref:   (N, 3C) bf16   VMEM scratch holding the fused qkv projection
        # acc_ref:   (N, C)  f32    VMEM accumulator for the output projection
        _, N, C = x_ref.shape

        # --- Fused bias-free QKV projection: one big bf16 MXU matmul. -------
        x = x_ref[0].astype(jnp.bfloat16)                          # (N, C)
        qkv = jnp.dot(x, wqkv_ref[...],
                      preferred_element_type=jnp.float32)          # (N, 3C) f32
        # Single cast to bf16, single fully-lane-dense store (3C % 128 == 0).
        qkv_ref[...] = qkv.astype(jnp.bfloat16)

        acc_ref[...] = jnp.zeros_like(acc_ref)

        # --- Per-head attention.  D is a multiple of 128 lanes, so every
        #     slice below is vreg-aligned (static, free Ref slices). ---------
        for h in range(H):
            q = qkv_ref[:, h * D:(h + 1) * D]                      # (N, D) bf16, pre-scaled
            k = qkv_ref[:, C + h * D:C + (h + 1) * D]              # (N, D) bf16
            v = qkv_ref[:, 2 * C + h * D:2 * C + (h + 1) * D]      # (N, D) bf16

            # Contract on D of BOTH operands -> MXU consumes k directly,
            # no explicit k.T relayout.  (scale already folded into q weights)
            s = lax.dot_general(
                q, k, (((1,), (1,)), ((), ())),
                preferred_element_type=jnp.float32)                # (N, N) f32

            # Numerically-stable softmax; denominator reciprocal on the EUP.
            s = s - jnp.max(s, axis=-1, keepdims=True)
            p = jnp.exp(s)
            p = p * pl.reciprocal(jnp.sum(p, axis=-1, keepdims=True),
                                  approx=True)

            # attn_drop has p=0.0 -> identity.
            ctx = jnp.dot(p.astype(jnp.bfloat16), v,
                          preferred_element_type=jnp.float32)      # (N, D) f32

            # Per-head accumulation of the output projection: row slice of
            # wproj at a multiple of 128 is sublane-aligned; the accumulator
            # store is fully lane-dense (C % 128 == 0).  No masked vst.
            acc_ref[...] += jnp.dot(
                ctx.astype(jnp.bfloat16),
                wproj_ref[h * D:(h + 1) * D, :],
                preferred_element_type=jnp.float32)                # (N, C)

        # Output projection bias (+ identity proj_drop), lane-dense store.
        o_ref[0] = (acc_ref[...] + bproj_ref[...]).astype(o_ref.dtype)

    return kernel


# ----------------------------------------------------------------------------
# Wrapper
# ----------------------------------------------------------------------------
def attention_forward(x, params, num_heads):
    """x: (B, N, C). params holds bf16 pre-transposed weights (prepared once)."""
    B, N, C = x.shape
    D = C // num_heads

    wqkv_t = params["w_qkv_t"]             # (C, 3C) bf16, scale folded into q columns
    wproj_t = params["w_proj_t"]           # (C, C)  bf16
    bproj = params["b_proj"].reshape(1, C)  # (1, C)  f32

    kernel = _make_fused_attn_kernel(num_heads, D)

    return pl.pallas_call(
        kernel,
        out_shape=jax.ShapeDtypeStruct((B, N, C), x.dtype),
        grid_spec=pltpu.PrefetchScalarGridSpec(
            num_scalar_prefetch=0,
            grid=(B,),
            in_specs=[
                pl.BlockSpec((1, N, C), lambda b: (b, 0, 0)),   # x: one batch/step
                pl.BlockSpec((C, 3 * C), lambda b: (0, 0)),     # weights stay resident
                pl.BlockSpec((C, C), lambda b: (0, 0)),
                pl.BlockSpec((1, C), lambda b: (0, 0)),
            ],
            out_specs=pl.BlockSpec((1, N, C), lambda b: (b, 0, 0)),
            scratch_shapes=[
                pltpu.VMEM((N, 3 * C), jnp.bfloat16),   # qkv (lane-dense, bf16)
                pltpu.VMEM((N, C), jnp.float32),        # output-projection accumulator
            ],
        ),
        compiler_params=pltpu.CompilerParams(
            dimension_semantics=("parallel",),       # B=2 feeds both v7x TCs
            vmem_limit_bytes=32 * 1024 * 1024,       # explicit budget; usage ~2 MiB
        ),
    )(x, wqkv_t, wproj_t, bproj)


# ----------------------------------------------------------------------------
# Pure-JAX reference (mirrors the PyTorch module) for correctness checking.
# ----------------------------------------------------------------------------
def attention_ref(x, w_qkv, w_proj, b_proj, num_heads):
    B, N, C = x.shape
    D = C // num_heads
    scale = D ** (-0.5)
    qkv = x @ w_qkv.T
    qkv = qkv.reshape(B, N, 3, num_heads, D).transpose(2, 0, 3, 1, 4)
    q, k, v = qkv[0], qkv[1], qkv[2]
    attn = (q @ jnp.swapaxes(k, -2, -1)) * scale
    attn = jax.nn.softmax(attn, axis=-1)
    o = (attn @ v).transpose(0, 2, 1, 3).reshape(B, N, C)
    return o @ w_proj.T + b_proj


# ----------------------------------------------------------------------------
# Main
# ----------------------------------------------------------------------------
if __name__ == "__main__":
    # Shapes chosen so every per-head slice / store is (8,128)-tile aligned:
    # C and N are multiples of 128, head_dim = 128, N is a multiple of 16 (bf16).
    B, N, C = 2, 128, 256
    num_heads = 2
    D = C // num_heads
    scale = D ** (-0.5)

    key = jax.random.PRNGKey(0)
    kx, kw1, kw2, kb2 = jax.random.split(key, 4)

    # PyTorch-Linear-like init in PyTorch layout (out_features, in_features).
    bound = 1.0 / (C ** 0.5)
    w_qkv = jax.random.uniform(kw1, (3 * C, C), jnp.float32, -bound, bound)
    w_proj = jax.random.uniform(kw2, (C, C), jnp.float32, -bound, bound)
    b_proj = jax.random.uniform(kb2, (C,), jnp.float32, -bound, bound)

    # One-time setup (outside the hot path): transpose weights, fold the
    # softmax scale into the q columns, cast to bf16 for MXU + halved DMA.
    w_qkv_t = w_qkv.T                                            # (C, 3C)
    col_scale = jnp.concatenate([jnp.full((C,), scale, jnp.float32),
                                 jnp.ones((2 * C,), jnp.float32)])
    w_qkv_t = w_qkv_t * col_scale[None, :]
    params = {
        "w_qkv_t": w_qkv_t.astype(jnp.bfloat16),   # (C, 3C) bf16
        "w_proj_t": w_proj.T.astype(jnp.bfloat16),  # (C, C)  bf16
        "b_proj": b_proj,                           # (C,)    f32
    }

    x = jax.random.normal(kx, (B, N, C), jnp.float32)

    y = attention_forward(x, params, num_heads)
    y = jax.block_until_ready(y)

    y_ref = attention_ref(x, w_qkv, w_proj, b_proj, num_heads)
    assert y.shape == (B, N, C)
    # bf16 matmul inputs (f32 accumulation) + approx reciprocal in the softmax
    # denominator -> re-baselined tolerance vs the full-f32 reference.
    max_err = jnp.max(jnp.abs(y - y_ref))
    assert jnp.allclose(y, y_ref, atol=3e-2, rtol=3e-2), (
        f"mismatch vs reference, max abs err = {max_err}")

    print("KERNEL_OK")
</pallas_src>

<mosaic_0001>
module attributes {stable_mosaic.version = 11 : i64} {
  func.func @kernel(%arg0: i32, %arg1: memref<1x128x256xf32, #tpu.memory_space<vmem>>, %arg2: memref<256x768xbf16, #tpu.memory_space<vmem>>, %arg3: memref<256x256xbf16, #tpu.memory_space<vmem>>, %arg4: memref<1x256xf32, #tpu.memory_space<vmem>>, %arg5: memref<1x128x256xf32, #tpu.memory_space<vmem>>, %arg6: memref<128x768xbf16, #tpu.memory_space<vmem>>, %arg7: memref<128x256xf32, #tpu.memory_space<vmem>>) attributes {dimension_semantics = [#tpu.dimension_semantics<parallel>], iteration_bounds = array<i64: 2>, scalar_prefetch = 0 : i64, scratch_operands = 2 : i64, tpu.core_type = #tpu.core_type<tc>, window_params = [{transform_indices = @transform_0, window_bounds = array<i64: 1, 128, 256>}, {pipeline_mode = #tpu.pipeline_mode<synchronous>, transform_indices = @transform_1, window_bounds = array<i64: 256, 768>}, {pipeline_mode = #tpu.pipeline_mode<synchronous>, transform_indices = @transform_2, window_bounds = array<i64: 256, 256>}, {pipeline_mode = #tpu.pipeline_mode<synchronous>, transform_indices = @transform_3, window_bounds = array<i64: 1, 256>}, {transform_indices = @transform_4, window_bounds = array<i64: 1, 128, 256>}]} {
    %c0 = arith.constant 0 : index
    %c0_0 = arith.constant 0 : index
    %c0_1 = arith.constant 0 : index
    %0 = vector.load %arg1[%c0, %c0_0, %c0_1] : memref<1x128x256xf32, #tpu.memory_space<vmem>>, vector<1x128x256xf32>
    %1 = vector.shape_cast %0 : vector<1x128x256xf32> to vector<128x256xf32>
    %2 = arith.truncf %1 : vector<128x256xf32> to vector<128x256xbf16>
    %c0_2 = arith.constant 0 : index
    %c0_3 = arith.constant 0 : index
    %3 = vector.load %arg2[%c0_2, %c0_3] : memref<256x768xbf16, #tpu.memory_space<vmem>>, vector<256x768xbf16>
    %cst = arith.constant dense<0.000000e+00> : vector<128x768xf32>
    %4 = tpu.matmul %2, %3, %cst {dimension_numbers = #tpu.dot_dimension_numbers<[1], [0], [0], [1], [0, 0, 1, 1], [], []>} : vector<128x256xbf16>, vector<256x768xbf16>, vector<128x768xf32> -> vector<128x768xf32>
    %5 = arith.truncf %4 : vector<128x768xf32> to vector<128x768xbf16>
    %c0_4 = arith.constant 0 : index
    %c0_5 = arith.constant 0 : index
    %6 = vector.load %arg6[%c0_4, %c0_5] : memref<128x768xbf16, #tpu.memory_space<vmem>>, vector<128x768xbf16>
    tpu.vector_store %arg6[%c0_4, %c0_5], %5 {strides = array<i32>} : memref<128x768xbf16, #tpu.memory_space<vmem>>, vector<128x768xbf16>,
    %cst_6 = arith.constant 0.000000e+00 : f32
    %7 = vector.broadcast %cst_6 : f32 to vector<128x256xf32>
    %c0_7 = arith.constant 0 : index
    %c0_8 = arith.constant 0 : index
    %8 = vector.load %arg7[%c0_7, %c0_8] : memref<128x256xf32, #tpu.memory_space<vmem>>, vector<128x256xf32>
    tpu.vector_store %arg7[%c0_7, %c0_8], %7 {strides = array<i32>} : memref<128x256xf32, #tpu.memory_space<vmem>>, vector<128x256xf32>,
    %c0_9 = arith.constant 0 : index
    %c0_10 = arith.constant 0 : index
    %9 = vector.load %arg6[%c0_9, %c0_10] : memref<128x768xbf16, #tpu.memory_space<vmem>>, vector<128x128xbf16>
    %c0_11 = arith.constant 0 : index
    %c256 = arith.constant 256 : index
    %10 = vector.load %arg6[%c0_11, %c256] : memref<128x768xbf16, #tpu.memory_space<vmem>>, vector<128x128xbf16>
    %c0_12 = arith.constant 0 : index
    %c512 = arith.constant 512 : index
    %11 = vector.load %arg6[%c0_12, %c512] : memref<128x768xbf16, #tpu.memory_space<vmem>>, vector<128x128xbf16>
    %cst_13 = arith.constant dense<0.000000e+00> : vector<128x128xf32>
    %12 = tpu.matmul %9, %10, %cst_13 {dimension_numbers = #tpu.dot_dimension_numbers<[1], [1], [0], [0], [0, 0, 1, 0], [], []>} : vector<128x128xbf16>, vector<128x128xbf16>, vector<128x128xf32> -> vector<128x128xf32>
    %cst_14 = arith.constant dense<0xFF800000> : vector<128xf32>
    %13 = vector.multi_reduction <maximumf>, %12, %cst_14 [1] : vector<128x128xf32> to vector<128xf32>
    %14 = vector.shape_cast %13 : vector<128xf32> to vector<128x1xf32>
    %15 = vector.broadcast %14 : vector<128x1xf32> to vector<128x128xf32>
    %16 = arith.subf %12, %15 : vector<128x128xf32>
    %17 = math.exp %16 : vector<128x128xf32>
    %cst_15 = arith.constant dense<0.000000e+00> : vector<128xf32>
    %18 = vector.multi_reduction <add>, %17, %cst_15 [1] : vector<128x128xf32> to vector<128xf32>
    %19 = vector.shape_cast %18 : vector<128xf32> to vector<128x1xf32>
    %20 = tpu.reciprocal %19 {approx = true} : vector<128x1xf32> -> vector<128x1xf32>
    %21 = vector.broadcast %20 : vector<128x1xf32> to vector<128x128xf32>
    %22 = arith.mulf %17, %21 : vector<128x128xf32>
    %23 = arith.truncf %22 : vector<128x128xf32> to vector<128x128xbf16>
    %cst_16 = arith.constant dense<0.000000e+00> : vector<128x128xf32>
    %24 = tpu.matmul %23, %11, %cst_16 {dimension_numbers = #tpu.dot_dimension_numbers<[1], [0], [0], [1], [0, 0, 1, 1], [], []>} : vector<128x128xbf16>, vector<128x128xbf16>, vector<128x128xf32> -> vector<128x128xf32>
    %c0_17 = arith.constant 0 : index
    %c0_18 = arith.constant 0 : index
    %25 = vector.load %arg7[%c0_17, %c0_18] : memref<128x256xf32, #tpu.memory_space<vmem>>, vector<128x256xf32>
    %26 = arith.truncf %24 : vector<128x128xf32> to vector<128x128xbf16>
    %c0_19 = arith.constant 0 : index
    %c0_20 = arith.constant 0 : index
    %27 = vector.load %arg3[%c0_19, %c0_20] : memref<256x256xbf16, #tpu.memory_space<vmem>>, vector<128x256xbf16>
    %cst_21 = arith.constant dense<0.000000e+00> : vector<128x256xf32>
    %28 = tpu.matmul %26, %27, %cst_21 {dimension_numbers = #tpu.dot_dimension_numbers<[1], [0], [0], [1], [0, 0, 1, 1], [], []>} : vector<128x128xbf16>, vector<128x256xbf16>, vector<128x256xf32> -> vector<128x256xf32>
    %29 = arith.addf %25, %28 : vector<128x256xf32>
    %c0_22 = arith.constant 0 : index
    %c0_23 = arith.constant 0 : index
    %30 = vector.load %arg7[%c0_22, %c0_23] : memref<128x256xf32, #tpu.memory_space<vmem>>, vector<128x256xf32>
    tpu.vector_store %arg7[%c0_22, %c0_23], %29 {strides = array<i32>} : memref<128x256xf32, #tpu.memory_space<vmem>>, vector<128x256xf32>,
    %c0_24 = arith.constant 0 : index
    %c128 = arith.constant 128 : index
    %31 = vector.load %arg6[%c0_24, %c128] : memref<128x768xbf16, #tpu.memory_space<vmem>>, vector<128x128xbf16>
    %c0_25 = arith.constant 0 : index
    %c384 = arith.constant 384 : index
    %32 = vector.load %arg6[%c0_25, %c384] : memref<128x768xbf16, #tpu.memory_space<vmem>>, vector<128x128xbf16>
    %c0_26 = arith.constant 0 : index
    %c640 = arith.constant 640 : index
    %33 = vector.load %arg6[%c0_26, %c640] : memref<128x768xbf16, #tpu.memory_space<vmem>>, vector<128x128xbf16>
    %cst_27 = arith.constant dense<0.000000e+00> : vector<128x128xf32>
    %34 = tpu.matmul %31, %32, %cst_27 {dimension_numbers = #tpu.dot_dimension_numbers<[1], [1], [0], [0], [0, 0, 1, 0], [], []>} : vector<128x128xbf16>, vector<128x128xbf16>, vector<128x128xf32> -> vector<128x128xf32>
    %cst_28 = arith.constant dense<0xFF800000> : vector<128xf32>
    %35 = vector.multi_reduction <maximumf>, %34, %cst_28 [1] : vector<128x128xf32> to vector<128xf32>
    %36 = vector.shape_cast %35 : vector<128xf32> to vector<128x1xf32>
    %37 = vector.broadcast %36 : vector<128x1xf32> to vector<128x128xf32>
    %38 = arith.subf %34, %37 : vector<128x128xf32>
    %39 = math.exp %38 : vector<128x128xf32>
    %cst_29 = arith.constant dense<0.000000e+00> : vector<128xf32>
    %40 = vector.multi_reduction <add>, %39, %cst_29 [1] : vector<128x128xf32> to vector<128xf32>
    %41 = vector.shape_cast %40 : vector<128xf32> to vector<128x1xf32>
    %42 = tpu.reciprocal %41 {approx = true} : vector<128x1xf32> -> vector<128x1xf32>
    %43 = vector.broadcast %42 : vector<128x1xf32> to vector<128x128xf32>
    %44 = arith.mulf %39, %43 : vector<128x128xf32>
    %45 = arith.truncf %44 : vector<128x128xf32> to vector<128x128xbf16>
    %cst_30 = arith.constant dense<0.000000e+00> : vector<128x128xf32>
    %46 = tpu.matmul %45, %33, %cst_30 {dimension_numbers = #tpu.dot_dimension_numbers<[1], [0], [0], [1], [0, 0, 1, 1], [], []>} : vector<128x128xbf16>, vector<128x128xbf16>, vector<128x128xf32> -> vector<128x128xf32>
    %c0_31 = arith.constant 0 : index
    %c0_32 = arith.constant 0 : index
    %47 = vector.load %arg7[%c0_31, %c0_32] : memref<128x256xf32, #tpu.memory_space<vmem>>, vector<128x256xf32>
    %48 = arith.truncf %46 : vector<128x128xf32> to vector<128x128xbf16>
    %c128_33 = arith.constant 128 : index
    %c0_34 = arith.constant 0 : index
    %49 = vector.load %arg3[%c128_33, %c0_34] : memref<256x256xbf16, #tpu.memory_space<vmem>>, vector<128x256xbf16>
    %cst_35 = arith.constant dense<0.000000e+00> : vector<128x256xf32>
    %50 = tpu.matmul %48, %49, %cst_35 {dimension_numbers = #tpu.dot_dimension_numbers<[1], [0], [0], [1], [0, 0, 1, 1], [], []>} : vector<128x128xbf16>, vector<128x256xbf16>, vector<128x256xf32> -> vector<128x256xf32>
    %51 = arith.addf %47, %50 : vector<128x256xf32>
    %c0_36 = arith.constant 0 : index
    %c0_37 = arith.constant 0 : index
    %52 = vector.load %arg7[%c0_36, %c0_37] : memref<128x256xf32, #tpu.memory_space<vmem>>, vector<128x256xf32>
    tpu.vector_store %arg7[%c0_36, %c0_37], %51 {strides = array<i32>} : memref<128x256xf32, #tpu.memory_space<vmem>>, vector<128x256xf32>,
    %c0_38 = arith.constant 0 : index
    %c0_39 = arith.constant 0 : index
    %53 = vector.load %arg7[%c0_38, %c0_39] : memref<128x256xf32, #tpu.memory_space<vmem>>, vector<128x256xf32>
    %c0_40 = arith.constant 0 : index
    %c0_41 = arith.constant 0 : index
    %54 = vector.load %arg4[%c0_40, %c0_41] : memref<1x256xf32, #tpu.memory_space<vmem>>, vector<1x256xf32>
    %55 = vector.broadcast %54 : vector<1x256xf32> to vector<128x256xf32>
    %56 = arith.addf %53, %55 : vector<128x256xf32>
    %c0_42 = arith.constant 0 : index
    %c0_43 = arith.constant 0 : index
    %c0_44 = arith.constant 0 : index
    %57 = vector.load %arg5[%c0_42, %c0_43, %c0_44] : memref<1x128x256xf32, #tpu.memory_space<vmem>>, vector<1x128x256xf32>
    %58 = vector.shape_cast %57 : vector<1x128x256xf32> to vector<128x256xf32>
    %59 = vector.shape_cast %56 : vector<128x256xf32> to vector<1x128x256xf32>
    tpu.vector_store %arg5[%c0_42, %c0_43, %c0_44], %59 {strides = array<i32>} : memref<1x128x256xf32, #tpu.memory_space<vmem>>, vector<1x128x256xf32>,
    return
  }
  func.func @transform_0(%arg0: i32) -> (i32, i32, i32) {
    %c0_i32 = arith.constant 0 : i32
    %c0_i32_0 = arith.constant 0 : i32
    %c0_i32_1 = arith.constant 0 : i32
    return %arg0, %c0_i32, %c0_i32_0 : i32, i32, i32
  }
  func.func @transform_1(%arg0: i32) -> (i32, i32) {
    %c0_i32 = arith.constant 0 : i32
    %c0_i32_0 = arith.constant 0 : i32
    %c0_i32_1 = arith.constant 0 : i32
    return %c0_i32, %c0_i32_0 : i32, i32
  }
  func.func @transform_2(%arg0: i32) -> (i32, i32) {
    %c0_i32 = arith.constant 0 : i32
    %c0_i32_0 = arith.constant 0 : i32
    %c0_i32_1 = arith.constant 0 : i32
    return %c0_i32, %c0_i32_0 : i32, i32
  }
  func.func @transform_3(%arg0: i32) -> (i32, i32) {
    %c0_i32 = arith.constant 0 : i32
    %c0_i32_0 = arith.constant 0 : i32
    %c0_i32_1 = arith.constant 0 : i32
    return %c0_i32, %c0_i32_0 : i32, i32
  }
  func.func @transform_4(%arg0: i32) -> (i32, i32, i32) {
    %c0_i32 = arith.constant 0 : i32
    %c0_i32_0 = arith.constant 0 : i32
    %c0_i32_1 = arith.constant 0 : i32
    return %arg0, %c0_i32, %c0_i32_0 : i32, i32, i32
  }
}

</mosaic_0001>

<bundles_post_ra>
// kernel: tpu_custom_call.1
= control target key start
LH: loop header
LB: loop body
LE: loop exit
PB: predicated region body
PF: predicated region fallthrough
CT: control target
= control target key end

     0   :  { %9 = vsyncpa [#allocation5], 0  ;;  %s5356_s0 = inlined_call_operand.hbm [shape: f32[2,128,256], index: 0, kind: input, shape index: {}]   ;;  %s5357_s1 = inlined_call_operand.hbm [shape: bf16[256,768], index: 1, kind: input, shape index: {}]   ;;  %s5358_s2 = inlined_call_operand.hbm [shape: bf16[256,256], index: 2, kind: input, shape index: {}]   ;;  %s5359_s3 = inlined_call_operand.vmem [shape: f32[1,256], index: 3, kind: input, shape index: {}]   ;;  %s5360_s4 = inlined_call_operand.hbm [shape: f32[2,128,256], index: 4, kind: output, shape index: {}]  }
   0x1   :  { %11 = vsyncpa [#allocation5 + $0x1], 0 }
   0x2   :  { %12 = vsyncpa [#allocation8], 0 }
   0x3   :  { %13 = vsyncpa [#allocation6], 0 }
   0x4   :  { %15 = vsyncpa [#allocation6 + $0x1], 0  ;;  %s4625_s15 = smov 0   ;;  %s4627_s16 = smov 0  }
   0x5   :  { %s4629_s17 = smov 0   ;;  %s4631_s18 = smov 0  }
   0x6 LB: > { %s4646_s19 = sadd.s32 4294967295, %s4585_s18   ;;  %s3493_s20 = sadd.s32 4294967294, %s4585_s18   ;;  %s4585_s18 = sphi %s4631_s18, %s5382_s18   ;;  %s4581_s17 = sphi %s4629_s17, %s5381_s17   ;;  %s4577_s16 = sphi %s4627_s16, %s5380_s16   ;;  %s4573_s15 = sphi %s4625_s15, %s5379_s15  }
   0x7   : > { %p41_p0 = scmp.ne.s32.totalorder %s4577_s16, %s4573_s15  ;;  %p5361_p1 = scmp.eq.s32.totalorder %s4646_s19, 0 }
   0x8   : > { %p134_p3 = scmp.eq.s32.totalorder %s3493_s20, 1  ;;  %p3494_p5 = scmp.ge.s32.totalorder %s4585_s18, 1 }
   0x9   : > { %p4655_p4 = por %p5361_p1, %p41_p0  ;;  %p141_p7 = scmp.lt.s32.totalorder %s4585_s18, 3 }
   0xa   : > { %p4660_p6 = por %p134_p3, %p41_p0  ;;  %s4587_s24 = smov [#allocation7]  }
   0xb   : > { %s5365_s21 = scalar_select %p4655_p4, 1, 0 }
   0xc   : > { %s5366_s22 = scalar_select %p4660_p6, 1, 0 }
   0xd   : > { %p4665_p8 = pnand %p3494_p5, %p141_p7  ;;  %s153_s25 = sshll.u32 %s4587_s24, 4  ;;  %s154_s25 = int_to_ptr.vmem [resolvable:$true] %s153_s25 }
   0xe   : > { %s4588_s27 = smov [#allocation9]   ;;  %s4448_s29 = scalar_lea.vmem %s154_s25, 12288 }
   0xf   : > { %s5367_s23 = scalar_select %p4665_p8, 1, 0 }
  0x10   : > { %p4005_p9 = pneg %p4665_p8  ;;  %s166_s28 = sshll.u32 %s4588_s27, 4  ;;  %s167_s28 = int_to_ptr.vmem [resolvable:$true] %s166_s28 }
  0x11   : > { %p4449_p13 = scmp.ne.s32.totalorder %s154_s25, %s4448_s29  ;;  %p4456_p5 = scmp.lt.s32.totalorder %s154_s25, %s154_s25 }
  0x12   : > { %p4674_p11 = pnand %p4005_p9, %p5361_p1  ;;  %p4457_p7 = scmp.lt.s32.totalorder %s4448_s29, %s4448_s29 }
  0x14   : > { %p4439_p12 = pneg %p4674_p11  ;;  %p4458_p10 = por %p4457_p7, %p4456_p5 }
  0x16   : > { %p4451_p0 = pnand %p4449_p13, %p4439_p12 }
  0x18   : > { %p4452_p3 = pneg %p4451_p0 }
  0x1a   : > { %p4459_p9 = pnand %p4458_p10, %p4452_p3 }
  0x1c   : > { %4462 = shalt.err (!%p4459_p9)
}
  0x1d   : > { %s4589_s30 = smov 384   ;;  %s4590_s5 = smov 24  }
  0x1e   : > { %4008 = dma.hbm_to_vmem [thread:$0]  (!%p4674_p11), %s5357_s1, 12288, %s154_s25, [#allocation8], %s4589_s30, %s4589_s30, %s4590_s5  }
  0x1f   : > { %s4474_s8 = scalar_lea.vmem %s167_s28, 4096  ;;  %p4482_p2 = scmp.lt.s32.totalorder %s167_s28, %s167_s28 }
  0x20   : > { %p4475_p1 = scmp.ne.s32.totalorder %s167_s28, %s4474_s8  ;;  %p4483_p6 = scmp.lt.s32.totalorder %s4474_s8, %s4474_s8 }
  0x22   : > { %p4477_p13 = pnand %p4475_p1, %p4439_p12  ;;  %p4484_p5 = por %p4483_p6, %p4482_p2 }
  0x24   : > { %p4478_p0 = pneg %p4477_p13 }
  0x26   : > { %p4485_p10 = pnand %p4484_p5, %p4478_p0 }
  0x28   : > { %4488 = shalt.err (!%p4485_p10)
}
  0x29   : > { %s4591_s9 = smov 128   ;;  %s4592_s10 = smov 8  }
  0x2a   : > { %4011 = dma.hbm_to_vmem [thread:$0]  (!%p4674_p11), %s5358_s2, 4096, %s167_s28, [#allocation8], %s4591_s9, %s4591_s9, %s4592_s10  }
  0x2b   : > { %s4697_s13 = sadd.s32 1, %s4585_s18   ;;  %s28_s20 = sadd.s32 1, %s4581_s17 }
  0x2c   : > { %s25_s14 = ssub.s32 %s4585_s18, %s4697_s13  ;;  %p35_p2 = scmp.ne.s32.totalorder %s4581_s17, %s4577_s16 }
  0x2d   : > { %p26_p1 = scmp.eq.s32.totalorder %s25_s14, 0  ;;  %p36_p6 = scmp.eq.s32.totalorder %s4585_s18, 0 }
  0x2e   : > { %p5369_p3 = scmp.eq.s32.totalorder %s4646_s19, 1  ;;  %p4022_p9 = scmp.lt.s32.totalorder %s4585_s18, 2 }
  0x2f   : > { %s4706_s24 = scalar_select %p26_p1, %s4581_s17, %s28_s20  }
  0x30   : > { %p37_p12 = por %p36_p6, %p35_p2  ;;  %p4710_p7 = por %p5369_p3, %p35_p2 }
  0x31   : > { %s183_s26 = sand.u32 1, %s4581_s17   ;;  %s3735_s28 = sshll.u32 %s4585_s18, 12 }
  0x32   : > { %s5370_s25 = scalar_select %p4710_p7, 1, 0 }
  0x33   : > { %s3498_s27 = sshll.u32 %s183_s26, 8  ;;  %s4720_s5 = scalar_lea.hbm %s5356_s0, %s3735_s28 }
  0x34   : > { %s187_s6 = scalar_lea.vmem [#allocation4], %s3498_s27  ;;  %p4724_p11 = pnand %p4022_p9, %p37_p12 }
  0x35   : > { %s194_s7 = sshll.u32 %s187_s6, 4  ;;  %s4728_s9 = scalar_lea.sflag [#allocation5], %s183_s26  ;;  %s4722_s7 = int_to_ptr.vmem [resolvable:$true] %s194_s7 }
  0x36   : > { %s4489_s10 = scalar_lea.hbm %s4720_s5, 4096  ;;  %p4491_p0 = pneg %p4724_p11 }
  0x37   : > { %p4490_p13 = scmp.ne.s32.totalorder %s4720_s5, %s4489_s10  ;;  %s4494_s14 = scalar_lea.hbm %s5356_s0, 8192 }
  0x38   : > { %p4495_p1 = scmp.lt.s32.totalorder %s4720_s5, %s5356_s0  ;;  %p4496_p2 = scmp.lt.s32.totalorder %s4494_s14, %s4489_s10 }
  0x39   : > { %p4492_p5 = pnand %p4491_p0, %p4490_p13 }
  0x3a   : > { %p4497_p6 = por %p4496_p2, %p4495_p1 }
  0x3b   : > { %p4493_p10 = pneg %p4492_p5 }
  0x3d   : > { %p4498_p12 = pnand %p4497_p6, %p4493_p10 }
  0x3f   : > { %4501 = shalt.err (!%p4498_p12)
}
  0x40   : > { %s4502_s26 = scalar_lea.vmem %s4722_s7, 4096  ;;  %s4593_s28 = smov [#allocation4]  }
  0x41   : > { %p4503_p3 = scmp.ne.s32.totalorder %s4722_s7, %s4502_s26  ;;  %s4507_s29 = sshll.u32 %s4593_s28, 4  ;;  %s4508_s29 = int_to_ptr.vmem [resolvable:$false] %s4507_s29 }
  0x42   : > { %s4509_s30 = scalar_lea.vmem %s4508_s29, 8192  ;;  %p4510_p5 = scmp.lt.s32.totalorder %s4722_s7, %s4508_s29 }
  0x43   : > { %p4505_p9 = pnand %p4503_p3, %p4491_p0  ;;  %p4511_p7 = scmp.lt.s32.totalorder %s4509_s30, %s4502_s26 }
  0x45   : > { %p4506_p13 = pneg %p4505_p9  ;;  %p4512_p4 = por %p4511_p7, %p4510_p5 }
  0x47   : > { %p4513_p8 = pnand %p4512_p4, %p4506_p13 }
  0x49   : > { %4516 = shalt.err (!%p4513_p8)
}
  0x4a   : > { %s4594_s6 = smov 256   ;;  %s4595_s10 = smov 16  }
  0x4b   : > { %4015 = dma.hbm_to_vmem [thread:$0]  (!%p4724_p11), %s4720_s5, 4096, %s4722_s7, %s4728_s9, %s4594_s6, %s4594_s6, %s4595_s10  }
  0x4c   : > { %p5372_p0 = scmp.ne.s32.totalorder %s5367_s23, 0 }
  0x4d   : > { %s4752_s11 = sand.u32 (!%p5372_p0), 1, %s4577_s16   ;;  %p5373_p4 = scmp.ne.s32.totalorder (!%p5372_p0), %s5365_s21, 0 }
  0x4e   : > { %206 = sbr.rel (%p5372_p0) target bundleno = 2044 (0x7fc), region = 36  ;;  %s3502_s12 = sshll.u32 (!%p5372_p0), %s4752_s11, 8 }
  0x4f   : > { %s209_s14 = scalar_lea.sflag (!%p5372_p0), [#allocation5], %s4752_s11  ;;  %s4758_s20 = scalar_lea.vmem (!%p5372_p0), [#allocation4], %s3502_s12 }
  0x53   : > { %4560 = dma.done.wait (%p5373_p4), %s209_s14, 4096  }
  0x54   : > { %4562 = vsyncadd (%p5373_p4), %s209_s14, 4294963200  ;;  %p5374_p8 = scmp.eq.s32.totalorder %s4646_s19, 0 }
  0x56   : > { %4564 = dma.done.wait (%p5374_p8), [#allocation8], 16384   ;;  %p5375_p7 = pmov %p5374_p8 }
  0x57   : > { %v4069_v0 = vld [vmem:[#allocation7 + $0x154] ss:$24 sps:$4 sm:$0xff]   ;;  %v4073_v2 = vld [vmem:[#allocation7 + $0x150] ss:$24 sps:$4 sm:$0xff]   ;;  %v4075_v4 = vld [vmem:[#allocation7 + $0x124] ss:$24 sps:$4 sm:$0xff]  }
  0x58   : > { %4566 = vsyncadd (%p5375_p7), [#allocation8], 4294950912  ;;  %v4071_v1 = vld [vmem:[#allocation7 + $0x15c] ss:$24 sps:$4 sm:$0xff]   ;;  %870 = vmatprep.subr.bf16.mxu0 %v4069_v0  ;;  %v4074_v3 = vld [vmem:[#allocation7 + $0x158] ss:$24 sps:$4 sm:$0xff]  }
  0x59   : > { %983 = vmatprep.subr.bf16.mxu1 %v4071_v1  ;;  %871 = vmatpush1.bf16.msra.mxu0 %v4073_v2  ;;  %v4077_v5 = vld [vmem:[#allocation7 + $0x12c] ss:$24 sps:$4 sm:$0xff]   ;;  %v4079_v6 = vld [vmem:[#allocation7 + $0x120] ss:$24 sps:$4 sm:$0xff]   ;;  %v4083_v9 = vld [vmem:[#allocation7 + $0xfc] ss:$24 sps:$4 sm:$0xff]  }
  0x5a   : > { %984 = vmatpush1.bf16.msra.mxu1 %v4074_v3  ;;  %872 = vmatprep.subr.bf16.mxu0 %v4075_v4  ;;  %v4080_v7 = vld [vmem:[#allocation7 + $0x128] ss:$24 sps:$4 sm:$0xff]   ;;  %v4081_v8 = vld [vmem:[#allocation7 + $0xf4] ss:$24 sps:$4 sm:$0xff]   ;;  %v4086_v11 = vld [vmem:[#allocation7 + $0xf8] ss:$24 sps:$4 sm:$0xff]  }
  0x5b   : > { %985 = vmatprep.subr.bf16.mxu1 %v4077_v5  ;;  %v4085_v10 = vld [vmem:[#allocation7 + $0xf0] ss:$24 sps:$4 sm:$0xff]   ;;  %v4087_v12 = vld [vmem:[#allocation7 + $0xc4] ss:$24 sps:$4 sm:$0xff]   ;;  %v4091_v14 = vld [vmem:[#allocation7 + $0xc0] ss:$24 sps:$4 sm:$0xff]  }
  0x5c   : > { %v4089_v13 = vld [vmem:[#allocation7 + $0xcc] ss:$24 sps:$4 sm:$0xff]   ;;  %v4092_v15 = vld [vmem:[#allocation7 + $0xc8] ss:$24 sps:$4 sm:$0xff]   ;;  %v4095_v17 = vld [vmem:[#allocation7 + $0x9c] ss:$24 sps:$4 sm:$0xff]  }
  0x5d   : > { %873 = vmatpush1.bf16.msra.mxu0 %v4079_v6  ;;  %v4093_v16 = vld [vmem:[#allocation7 + $0x94] ss:$24 sps:$4 sm:$0xff]   ;;  %v4097_v18 = vld [vmem:[#allocation7 + $0x90] ss:$24 sps:$4 sm:$0xff]   ;;  %v4099_v20 = vld [vmem:[#allocation7 + $0x64] ss:$24 sps:$4 sm:$0xff]  }
  0x5e   : > { %986 = vmatpush1.bf16.msra.mxu1 %v4080_v7  ;;  %874 = vmatprep.subr.bf16.mxu0 %v4081_v8  ;;  %v4098_v19 = vld [vmem:[#allocation7 + $0x98] ss:$24 sps:$4 sm:$0xff]   ;;  %v4101_v21 = vld [vmem:[#allocation7 + $0x6c] ss:$24 sps:$4 sm:$0xff]   ;;  %v4104_v23 = vld [vmem:[#allocation7 + $0x68] ss:$24 sps:$4 sm:$0xff]  }
  0x5f   : > { %987 = vmatprep.subr.bf16.mxu1 %v4083_v9  ;;  %v4103_v22 = vld [vmem:[#allocation7 + $0x60] ss:$24 sps:$4 sm:$0xff]   ;;  %v4105_v24 = vld [vmem:[#allocation7 + $0x34] ss:$24 sps:$4 sm:$0xff]   ;;  %v4109_v26 = vld [vmem:[#allocation7 + $0x30] ss:$24 sps:$4 sm:$0xff]  }
  0x60   : > { %v4107_v25 = vld [vmem:[#allocation7 + $0x3c] ss:$24 sps:$4 sm:$0xff]   ;;  %v4110_v27 = vld [vmem:[#allocation7 + $0x38] ss:$24 sps:$4 sm:$0xff]   ;;  %v4113_v29 = vld [vmem:[#allocation7 + $0xc] ss:$24 sps:$4 sm:$0xff]  }
  0x61   : > { %875 = vmatpush1.bf16.msra.mxu0 %v4085_v10  ;;  %v4111_v28 = vld [vmem:[#allocation7 + $0x4] ss:$24 sps:$4 sm:$0xff]   ;;  %v4115_v30 = vld [vmem:[#allocation7] ss:$24 sps:$4 sm:$0xff]   ;;  %v4117_v32 = vld [vmem:[#allocation7 + $0x2d4] ss:$24 sps:$4 sm:$0xff]  }
  0x62   : > { %988 = vmatpush1.bf16.msra.mxu1 %v4086_v11  ;;  %876 = vmatprep.subr.bf16.mxu0 %v4087_v12  ;;  %v4116_v31 = vld [vmem:[#allocation7 + $0x8] ss:$24 sps:$4 sm:$0xff]   ;;  %v4119_v33 = vld [vmem:[#allocation7 + $0x2dc] ss:$24 sps:$4 sm:$0xff]   ;;  %v4122_v35 = vld [vmem:[#allocation7 + $0x2d8] ss:$24 sps:$4 sm:$0xff]  }
  0x63   : > { %989 = vmatprep.subr.bf16.mxu1 %v4089_v13  ;;  %v4121_v34 = vld [vmem:[#allocation7 + $0x2d0] ss:$24 sps:$4 sm:$0xff]   ;;  %v4123_v36 = vld [vmem:[#allocation7 + $0x2a4] ss:$24 sps:$4 sm:$0xff]   ;;  %v4127_v38 = vld [vmem:[#allocation7 + $0x2a0] ss:$24 sps:$4 sm:$0xff]  }
  0x64   : > { %v4125_v37 = vld [vmem:[#allocation7 + $0x2ac] ss:$24 sps:$4 sm:$0xff]   ;;  %v4128_v39 = vld [vmem:[#allocation7 + $0x2a8] ss:$24 sps:$4 sm:$0xff]   ;;  %v4131_v41 = vld [vmem:[#allocation7 + $0x27c] ss:$24 sps:$4 sm:$0xff]  }
  0x65   : > { %877 = vmatpush1.bf16.msra.mxu0 %v4091_v14  ;;  %v4129_v40 = vld [vmem:[#allocation7 + $0x274] ss:$24 sps:$4 sm:$0xff]   ;;  %v4133_v42 = vld [vmem:[#allocation7 + $0x270] ss:$24 sps:$4 sm:$0xff]   ;;  %v4135_v44 = vld [vmem:[#allocation7 + $0x244] ss:$24 sps:$4 sm:$0xff]  }
  0x66   : > { %990 = vmatpush1.bf16.msra.mxu1 %v4092_v15  ;;  %878 = vmatprep.subr.bf16.mxu0 %v4093_v16  ;;  %v4134_v43 = vld [vmem:[#allocation7 + $0x278] ss:$24 sps:$4 sm:$0xff]   ;;  %v4137_v45 = vld [vmem:[#allocation7 + $0x24c] ss:$24 sps:$4 sm:$0xff]   ;;  %v4140_v48 = vld [vmem:[#allocation7 + $0x248] ss:$24 sps:$4 sm:$0xff]  }
  0x67   : > { %991 = vmatprep.subr.bf16.mxu1 %v4095_v17  ;;  %v247_v46 = vld [vmem:[%s4758_s20 + $0x8] sm:$0xff]  ;;  %v4139_v47 = vld [vmem:[#allocation7 + $0x240] ss:$24 sps:$4 sm:$0xff]   ;;  %v4143_v52 = vld [vmem:[#allocation7 + $0x21c] ss:$24 sps:$4 sm:$0xff]   ;;  %s5211_s5 = scalar_lea.vmem [#allocation10], %s3502_s12 }
  0x68   : > { %v249_v49 = vld [vmem:[%s4758_s20 + $0x18] sm:$0xff]  ;;  %v4141_v50 = vld [vmem:[#allocation7 + $0x214] ss:$24 sps:$4 sm:$0xff]   ;;  %v4145_v53 = vld [vmem:[#allocation7 + $0x210] ss:$24 sps:$4 sm:$0xff]   ;;  %s3784_s7 = sshll.u32 %s4646_s19, 12 }
  0x69   : > { %879 = vmatpush1.bf16.msra.mxu0 %v4097_v18  ;;  %v4770_v51 = vpack.c.bf16 %v249_v49, %v247_v46  ;;  %v4146_v54 = vld [vmem:[#allocation7 + $0x218] ss:$24 sps:$4 sm:$0xff]   ;;  %v4147_v55 = vld [vmem:[#allocation7 + $0x1e4] ss:$24 sps:$4 sm:$0xff]   ;;  %v4152_v58 = vld [vmem:[#allocation7 + $0x1e8] ss:$24 sps:$4 sm:$0xff]   ;;  %s5308_s26 = scalar_lea.hbm %s5360_s4, %s3784_s7 }
  0x6a   : > { %992 = vmatpush1.bf16.msra.mxu1 %v4098_v19  ;;  %880 = vmatprep.subr.bf16.mxu0 %v4099_v20  ;;  %v4149_v56 = vld [vmem:[#allocation7 + $0x1ec] ss:$24 sps:$4 sm:$0xff]   ;;  %v4151_v57 = vld [vmem:[#allocation7 + $0x1e0] ss:$24 sps:$4 sm:$0xff]   ;;  %v4155_v60 = vld [vmem:[#allocation7 + $0x1bc] ss:$24 sps:$4 sm:$0xff]  }
  0x6b   : > { %993 = vmatprep.subr.bf16.mxu1 %v4101_v21  ;;  %902 = vmatprep.mubr.bf16.mxu0 %v4770_v51  ;;  %v4153_v59 = vld [vmem:[#allocation7 + $0x1b4] ss:$24 sps:$4 sm:$0xff]   ;;  %v4157_v61 = vld [vmem:[#allocation7 + $0x1b0] ss:$24 sps:$4 sm:$0xff]   ;;  %v4159_v63 = vld [vmem:[#allocation7 + $0x184] ss:$24 sps:$4 sm:$0xff]  }
  0x6c   : > { %1015 = vmatprep.mubr.bf16.mxu1 %v4770_v51  ;;  %v4158_v62 = vld [vmem:[#allocation7 + $0x1b8] ss:$24 sps:$4 sm:$0xff]   ;;  %v4161_v0 = vld [vmem:[#allocation7 + $0x18c] ss:$24 sps:$4 sm:$0xff]   ;;  %v4164_v2 = vld [vmem:[#allocation7 + $0x188] ss:$24 sps:$4 sm:$0xff]  }
  0x6d   : > { %881 = vmatpush1.bf16.msra.mxu0 %v4103_v22  ;;  %v4163_v1 = vld [vmem:[#allocation7 + $0x180] ss:$24 sps:$4 sm:$0xff]   ;;  %v248_v4 = vld [vmem:[%s4758_s20 + $0x10] sm:$0xff]  ;;  %v4167_v5 = vld [vmem:[#allocation7 + $0x164] ss:$24 sps:$4 sm:$0xff]   ;;  %s3401_s8 = sshll.u32 %s5211_s5, 4  ;;  %s5310_s8 = int_to_ptr.vmem [resolvable:$true] %s3401_s8 }
  0x6e   : > { %994 = vmatpush1.bf16.msra.mxu1 %v4104_v23  ;;  %882 = vmatprep.subr.bf16.mxu0 %v4105_v24  ;;  %v246_v3 = vld [vmem:[%s4758_s20] sm:$0xff]  ;;  %v251_v6 = vld [vmem:[%s4758_s20 + $0x28] sm:$0xff]  ;;  %v253_v7 = vld [vmem:[%s4758_s20 + $0x38] sm:$0xff]  ;;  %s3388_s19 = scalar_lea.sflag [#allocation6], %s4752_s11  ;;  %s4517_s28 = scalar_lea.vmem %s5310_s8, 4096 }
  0x6f   : > { %995 = vmatprep.subr.bf16.mxu1 %v4107_v25  ;;  %v4778_v8 = vpack.c.bf16 %v248_v4, %v246_v3  ;;  %v4165_v9 = vld [vmem:[#allocation7 + $0x160] ss:$24 sps:$4 sm:$0xff]   ;;  %v4780_v10 = vpack.c.bf16 %v253_v7, %v251_v6  ;;  %v4170_v11 = vld [vmem:[#allocation7 + $0x134] ss:$24 sps:$4 sm:$0xff]   ;;  %v4168_v12 = vld [vmem:[#allocation7 + $0x130] ss:$24 sps:$4 sm:$0xff]   ;;  %p4518_p11 = scmp.ne.s32.totalorder %s5310_s8, %s4517_s28 }
  0x70   : > { %v250_v13 = vld [vmem:[%s4758_s20 + $0x20] sm:$0xff]  ;;  %v252_v14 = vld [vmem:[%s4758_s20 + $0x30] sm:$0xff]  ;;  %v255_v16 = vld [vmem:[%s4758_s20 + $0x48] sm:$0xff]  ;;  %p5376_p10 = scmp.ne.s32.totalorder %s5370_s25, 0  ;;  %s4597_s29 = smov [#allocation10]  }
  0x71   : > { %883 = vmatpush1.bf16.msra.mxu0 %v4109_v26  ;;  %v4173_v15 = vld [vmem:[#allocation7 + $0x104] ss:$24 sps:$4 sm:$0xff]   ;;  %v4790_v18 = vpack.c.bf16 %v252_v14, %v250_v13  ;;  %v4171_v19 = vld [vmem:[#allocation7 + $0x100] ss:$24 sps:$4 sm:$0xff]   ;;  %v4176_v21 = vld [vmem:[#allocation7 + $0xd4] ss:$24 sps:$4 sm:$0xff]  }
  0x72   : > { %996 = vmatpush1.bf16.msra.mxu1 %v4110_v27  ;;  %884 = vmatprep.subr.bf16.mxu0 %v4111_v28  ;;  %v257_v17 = vld [vmem:[%s4758_s20 + $0x58] sm:$0xff]  ;;  %v4174_v22 = vld [vmem:[#allocation7 + $0xd0] ss:$24 sps:$4 sm:$0xff]   ;;  %v254_v23 = vld [vmem:[%s4758_s20 + $0x40] sm:$0xff]  ;;  %p4519_p1 = pnand %p4518_p11, %p5376_p10  ;;  %s4521_s30 = sshll.u32 %s4597_s29, 4  ;;  %s4522_s30 = int_to_ptr.vmem [resolvable:$false] %s4521_s30 }
  0x73   : > { %997 = vmatprep.subr.bf16.mxu1 %v4113_v29  ;;  %v4792_v20 = vpack.c.bf16 %v257_v17, %v255_v16  ;;  %v256_v24 = vld [vmem:[%s4758_s20 + $0x50] sm:$0xff]  ;;  %v4179_v25 = vld [vmem:[#allocation7 + $0xa4] ss:$24 sps:$4 sm:$0xff]   ;;  %v259_v26 = vld [vmem:[%s4758_s20 + $0x68] sm:$0xff]  ;;  %s4523_s6 = scalar_lea.vmem %s4522_s30, 8192  ;;  %p4524_p6 = scmp.lt.s32.totalorder %s5310_s8, %s4522_s30 }
  0x74   : > { %v261_v27 = vld [vmem:[%s4758_s20 + $0x78] sm:$0xff]  ;;  %v4802_v29 = vpack.c.bf16 %v256_v24, %v254_v23  ;;  %v267_v46 = vld [vmem:[%s4758_s20 + $0xa8] sm:$0xff]  ;;  %v276_v13 = vld [vmem:[%s4758_s20 + $0xf0] sm:$0xff]  ;;  %p4520_p2 = pneg %p4519_p1  ;;  %p4525_p12 = scmp.lt.s32.totalorder %s4523_s6, %s4517_s28 }
  0x75   : > { %885 = vmatpush1.bf16.msra.mxu0 %v4115_v30  ;;  %v4177_v28 = vld [vmem:[#allocation7 + $0xa0] ss:$24 sps:$4 sm:$0xff]   ;;  %v4182_v30 = vld [vmem:[#allocation7 + $0x74] ss:$24 sps:$4 sm:$0xff]   ;;  %v4209_v14 = vld [vmem:[#allocation7 + $0x1c4] ss:$24 sps:$4 sm:$0xff]  }
  0x76   : > { %998 = vmatpush1.bf16.msra.mxu1 %v4116_v31  ;;  %886 = vmatprep.subr.bf16.mxu0 %v4117_v32  ;;  %v4804_v31 = vpack.c.bf16 %v261_v27, %v259_v26  ;;  %v4180_v32 = vld [vmem:[#allocation7 + $0x70] ss:$24 sps:$4 sm:$0xff]   ;;  %v4189_v49 = vld [vmem:[#allocation7 + $0x2e0] ss:$24 sps:$4 sm:$0xff]   ;;  %v4212_v17 = vld [vmem:[#allocation7 + $0x194] ss:$24 sps:$4 sm:$0xff]   ;;  %p4526_p3 = por %p4525_p12, %p4524_p6 }
  0x77   : > { %999 = vmatprep.subr.bf16.mxu1 %v4119_v33  ;;  %v258_v33 = vld [vmem:[%s4758_s20 + $0x60] sm:$0xff]  ;;  %v275_v3 = vld [vmem:[%s4758_s20 + $0xe8] sm:$0xff]  ;;  %v277_v4 = vld [vmem:[%s4758_s20 + $0xf8] sm:$0xff] }
  0x78   : > { %v4201_v6 = vld [vmem:[#allocation7 + $0x220] ss:$24 sps:$4 sm:$0xff]   ;;  %v293_v7 = vpack.c.bf16 %v277_v4, %v275_v3  ;;  %p4527_p9 = pnand %p4526_p3, %p4520_p2 }
  0x79   : > { %887 = vmatpush2.bf16.msra.mxu0 %v4121_v34  ;;  %v260_v34 = vld [vmem:[%s4758_s20 + $0x70] sm:$0xff]  ;;  %v4207_v16 = vld [vmem:[#allocation7 + $0x1c0] ss:$24 sps:$4 sm:$0xff]  }
  0x7a   : > { %1000 = vmatpush2.bf16.msra.mxu1 %v4122_v35  ;;  %888 = vmatprep.subr.bf16.mxu0 %v4123_v36  ;;  %v4185_v35 = vld [vmem:[#allocation7 + $0x44] ss:$24 sps:$4 sm:$0xff]   ;;  %v263_v36 = vld [vmem:[%s4758_s20 + $0x88] sm:$0xff] }
  0x7b   : > { %1001 = vmatprep.subr.bf16.mxu1 %v4125_v37  ;;  %v265_v37 = vld [vmem:[%s4758_s20 + $0x98] sm:$0xff] }
  0x7d   : > { %889 = vmatpush2.bf16.msra.mxu0 %v4127_v38  ;;  %v4814_v38 = vpack.c.bf16 %v260_v34, %v258_v33 }
  0x7e   : > { %1002 = vmatpush2.bf16.msra.mxu1 %v4128_v39  ;;  %890 = vmatprep.subr.bf16.mxu0 %v4129_v40  ;;  %v4183_v39 = vld [vmem:[#allocation7 + $0x40] ss:$24 sps:$4 sm:$0xff]   ;;  %v4816_v40 = vpack.c.bf16 %v265_v37, %v263_v36 }
  0x7f   : > { %1003 = vmatprep.subr.bf16.mxu1 %v4131_v41  ;;  %v4188_v41 = vld [vmem:[#allocation7 + $0x14] ss:$24 sps:$4 sm:$0xff]  }
  0x81   : > { %891 = vmatpush2.bf16.msra.mxu0 %v4133_v42  ;;  %v4186_v42 = vld [vmem:[#allocation7 + $0x10] ss:$24 sps:$4 sm:$0xff]  }
  0x82   : > { %1004 = vmatpush2.bf16.msra.mxu1 %v4134_v43  ;;  %892 = vmatprep.subr.bf16.mxu0 %v4135_v44  ;;  %v262_v43 = vld [vmem:[%s4758_s20 + $0x80] sm:$0xff]  ;;  %v264_v44 = vld [vmem:[%s4758_s20 + $0x90] sm:$0xff] }
  0x83   : > { %1005 = vmatprep.subr.bf16.mxu1 %v4137_v45  ;;  %v4191_v45 = vld [vmem:[#allocation7 + $0x2e4] ss:$24 sps:$4 sm:$0xff]  }
  0x85   : > { %893 = vmatpush2.bf16.msra.mxu0 %v4139_v47  ;;  %v269_v47 = vld [vmem:[%s4758_s20 + $0xb8] sm:$0xff] }
  0x86   : > { %1006 = vmatpush2.bf16.msra.mxu1 %v4140_v48  ;;  %894 = vmatprep.subr.bf16.mxu0 %v4141_v50  ;;  %v4826_v48 = vpack.c.bf16 %v264_v44, %v262_v43  ;;  %v4828_v50 = vpack.c.bf16 %v269_v47, %v267_v46 }
  0x87   : > { %1007 = vmatprep.subr.bf16.mxu1 %v4143_v52  ;;  %v4194_v52 = vld [vmem:[#allocation7 + $0x2b4] ss:$24 sps:$4 sm:$0xff]  }
  0x89   : > { %895 = vmatpush2.bf16.msra.mxu0 %v4145_v53  ;;  %v4192_v53 = vld [vmem:[#allocation7 + $0x2b0] ss:$24 sps:$4 sm:$0xff]  }
  0x8a   : > { %1008 = vmatpush2.bf16.msra.mxu1 %v4146_v54  ;;  %896 = vmatprep.subr.bf16.mxu0 %v4147_v55  ;;  %v266_v54 = vld [vmem:[%s4758_s20 + $0xa0] sm:$0xff]  ;;  %v268_v55 = vld [vmem:[%s4758_s20 + $0xb0] sm:$0xff] }
  0x8b   : > { %1009 = vmatprep.subr.bf16.mxu1 %v4149_v56  ;;  %v4197_v56 = vld [vmem:[#allocation7 + $0x284] ss:$24 sps:$4 sm:$0xff]  }
  0x8d   : > { %897 = vmatpush2.bf16.msra.mxu0 %v4151_v57  ;;  %v271_v57 = vld [vmem:[%s4758_s20 + $0xc8] sm:$0xff] }
  0x8e   : > { %1010 = vmatpush2.bf16.msra.mxu1 %v4152_v58  ;;  %898 = vmatprep.subr.bf16.mxu0 %v4153_v59  ;;  %v273_v58 = vld [vmem:[%s4758_s20 + $0xd8] sm:$0xff]  ;;  %v288_v59 = vpack.c.bf16 %v268_v55, %v266_v54 }
  0x8f   : > { %1011 = vmatprep.subr.bf16.mxu1 %v4155_v60  ;;  %v4195_v60 = vld [vmem:[#allocation7 + $0x280] ss:$24 sps:$4 sm:$0xff]  }
  0x91   : > { %899 = vmatpush2.bf16.msra.mxu0 %v4157_v61  ;;  %v291_v61 = vpack.c.bf16 %v273_v58, %v271_v57 }
  0x92   : > { %1012 = vmatpush2.bf16.msra.mxu1 %v4158_v62  ;;  %900 = vmatprep.subr.bf16.mxu0 %v4159_v63  ;;  %v4200_v62 = vld [vmem:[#allocation7 + $0x254] ss:$24 sps:$4 sm:$0xff]   ;;  %v4198_v63 = vld [vmem:[#allocation7 + $0x250] ss:$24 sps:$4 sm:$0xff]  }
  0x93   : > { %1013 = vmatprep.subr.bf16.mxu1 %v4161_v0  ;;  %v270_v0 = vld [vmem:[%s4758_s20 + $0xc0] sm:$0xff] }
  0x95   : > { %901 = vmatpush2.bf16.msra.mxu0 %v4163_v1  ;;  %v272_v1 = vld [vmem:[%s4758_s20 + $0xd0] sm:$0xff] }
  0x96   : > { %1014 = vmatpush2.bf16.msra.mxu1 %v4164_v2  ;;  %1096 = vmatprep.subr.bf16.mxu0 %v4167_v5  ;;  %v4203_v2 = vld [vmem:[#allocation7 + $0x224] ss:$24 sps:$4 sm:$0xff]   ;;  %v290_v5 = vpack.c.bf16 %v272_v1, %v270_v0 }
  0x98   : > { %903 = vmatmul.mubr.bf16.vlgmr.msra.gmra.mxu0 %v4778_v8 }
  0x99   : > { %1016 = vmatmul.mubr.bf16.vlgmr.msra.gmra.mxu1 %v4778_v8  ;;  %1097 = vmatpush1.bf16.msra.mxu0 %v4165_v9  ;;  %v4206_v9 = vld [vmem:[#allocation7 + $0x1f4] ss:$24 sps:$4 sm:$0xff]  }
  0x9a   : > { %912 = vmatprep.mubr.bf16.mxu0 %v4780_v10  ;;  %1098 = vmatprep.subr.bf16.mxu0 %v4170_v11  ;;  %v4204_v11 = vld [vmem:[#allocation7 + $0x1f0] ss:$24 sps:$4 sm:$0xff]  }
  0x9b   : > { %1025 = vmatprep.mubr.bf16.mxu1 %v4780_v10 }
  0x9d   : > { %1099 = vmatpush1.bf16.msra.mxu0 %v4168_v12  ;;  %v274_v12 = vld [vmem:[%s4758_s20 + $0xe0] sm:$0xff] }
  0x9e   : > { %1100 = vmatprep.subr.bf16.mxu0 %v4173_v15  ;;  %v292_v15 = vpack.c.bf16 %v276_v13, %v274_v12 }
  0xa0   : > { %913 = vmatmul.mubr.bf16.gmra.mxu0 %v4790_v18 }
  0xa1   : > { %1026 = vmatmul.mubr.bf16.gmra.mxu1 %v4790_v18  ;;  %1101 = vmatpush1.bf16.msra.mxu0 %v4171_v19  ;;  %v4210_v19 = vld [vmem:[#allocation7 + $0x190] ss:$24 sps:$4 sm:$0xff]  }
  0xa2   : > { %922 = vmatprep.mubr.bf16.mxu0 %v4792_v20  ;;  %1102 = vmatprep.subr.bf16.mxu0 %v4176_v21 }
  0xa3   : > { %1035 = vmatprep.mubr.bf16.mxu1 %v4792_v20 }
  0xa5   : > { %1103 = vmatpush1.bf16.msra.mxu0 %v4174_v22 }
  0xa6   : > { %1104 = vmatprep.subr.bf16.mxu0 %v4179_v25 }
  0xa8   : > { %923 = vmatmul.mubr.bf16.gmra.mxu0 %v4802_v29 }
  0xa9   : > { %1036 = vmatmul.mubr.bf16.gmra.mxu1 %v4802_v29  ;;  %1105 = vmatpush1.bf16.msra.mxu0 %v4177_v28 }
  0xaa   : > { %932 = vmatprep.mubr.bf16.mxu0 %v4804_v31  ;;  %1106 = vmatprep.subr.bf16.mxu0 %v4182_v30 }
  0xab   : > { %1045 = vmatprep.mubr.bf16.mxu1 %v4804_v31 }
  0xad   : > { %1107 = vmatpush1.bf16.msra.mxu0 %v4180_v32 }
  0xae   : > { %1108 = vmatprep.subr.bf16.mxu0 %v4185_v35 }
  0xb0   : > { %933 = vmatmul.mubr.bf16.gmra.mxu0 %v4814_v38 }
  0xb1   : > { %1046 = vmatmul.mubr.bf16.gmra.mxu1 %v4814_v38  ;;  %1109 = vmatpush1.bf16.msra.mxu0 %v4183_v39 }
  0xb2   : > { %942 = vmatprep.mubr.bf16.mxu0 %v4816_v40  ;;  %1110 = vmatprep.subr.bf16.mxu0 %v4188_v41 }
  0xb3   : > { %1055 = vmatprep.mubr.bf16.mxu1 %v4816_v40 }
  0xb5   : > { %1111 = vmatpush1.bf16.msra.mxu0 %v4186_v42 }
  0xb6   : > { %1112 = vmatprep.subr.bf16.mxu0 %v4191_v45 }
  0xb8   : > { %943 = vmatmul.mubr.bf16.gmra.mxu0 %v4826_v48 }
  0xb9   : > { %1056 = vmatmul.mubr.bf16.gmra.mxu1 %v4826_v48  ;;  %1113 = vmatpush2.bf16.msra.mxu0 %v4189_v49 }
  0xba   : > { %952 = vmatprep.mubr.bf16.mxu0 %v4828_v50  ;;  %1114 = vmatprep.subr.bf16.mxu0 %v4194_v52 }
  0xbb   : > { %1065 = vmatprep.mubr.bf16.mxu1 %v4828_v50 }
  0xbd   : > { %1115 = vmatpush2.bf16.msra.mxu0 %v4192_v53 }
  0xbe   : > { %1116 = vmatprep.subr.bf16.mxu0 %v4197_v56 }
  0xc0   : > { %953 = vmatmul.mubr.bf16.gmra.mxu0 %v288_v59 }
  0xc1   : > { %1066 = vmatmul.mubr.bf16.gmra.mxu1 %v288_v59  ;;  %1117 = vmatpush2.bf16.msra.mxu0 %v4195_v60 }
  0xc2   : > { %962 = vmatprep.mubr.bf16.mxu0 %v291_v61  ;;  %1118 = vmatprep.subr.bf16.mxu0 %v4200_v62 }
  0xc3   : > { %1075 = vmatprep.mubr.bf16.mxu1 %v291_v61 }
  0xc5   : > { %1119 = vmatpush2.bf16.msra.mxu0 %v4198_v63 }
  0xc6   : > { %1120 = vmatprep.subr.bf16.mxu0 %v4203_v2 }
  0xc8   : > { %963 = vmatmul.mubr.bf16.gmra.mxu0 %v290_v5 }
  0xc9   : > { %1076 = vmatmul.mubr.bf16.gmra.mxu1 %v290_v5  ;;  %1121 = vmatpush2.bf16.msra.mxu0 %v4201_v6 }
  0xca   : > { %972 = vmatprep.mubr.bf16.mxu0 %v293_v7  ;;  %1122 = vmatprep.subr.bf16.mxu0 %v4206_v9 }
  0xcb   : > { %1085 = vmatprep.mubr.bf16.mxu1 %v293_v7 }
  0xcd   : > { %1123 = vmatpush2.bf16.msra.mxu0 %v4204_v11 }
  0xce   : > { %1124 = vmatprep.subr.bf16.mxu0 %v4209_v14 }
  0xd0   : > { %973 = vmatmul.mubr.bf16.gmra.mxu0 %v292_v15 }
  0xd1   : > { %1086 = vmatmul.mubr.bf16.gmra.mxu1 %v292_v15  ;;  %1125 = vmatpush2.bf16.msra.mxu0 %v4207_v16 }
  0xd2   : > { %1128 = vmatprep.mubr.bf16.mxu0 %v4770_v51  ;;  %1126 = vmatprep.subr.bf16.mxu0 %v4212_v17 }
  0xd5   : > { %1127 = vmatpush2.bf16.msra.mxu0 %v4210_v19 }
  0xd8   : > { %1129 = vmatmul.mubr.bf16.vlgmr.msra.gmra.mxu0 %v4778_v8 }
  0xd9   : > { %1138 = vmatprep.mubr.bf16.mxu0 %v4780_v10 }
  0xe0   : > { %1139 = vmatmul.mubr.bf16.gmra.mxu0 %v4790_v18 }
  0xe1   : > { %1148 = vmatprep.mubr.bf16.mxu0 %v4792_v20 }
  0xe8   : > { %1149 = vmatmul.mubr.bf16.gmra.mxu0 %v4802_v29 }
  0xe9   : > { %1158 = vmatprep.mubr.bf16.mxu0 %v4804_v31 }
  0xf0   : > { %1159 = vmatmul.mubr.bf16.gmra.mxu0 %v4814_v38 }
  0xf1   : > { %1168 = vmatprep.mubr.bf16.mxu0 %v4816_v40 }
  0xf8   : > { %1169 = vmatmul.mubr.bf16.gmra.mxu0 %v4826_v48 }
  0xf9   : > { %1178 = vmatprep.mubr.bf16.mxu0 %v4828_v50 }
 0x100   : > { %1179 = vmatmul.mubr.bf16.gmra.mxu0 %v288_v59 }
 0x101   : > { %1188 = vmatprep.mubr.bf16.mxu0 %v291_v61 }
 0x108   : > { %1189 = vmatmul.mubr.bf16.gmra.mxu0 %v290_v5 }
 0x109   : > { %1198 = vmatprep.mubr.bf16.mxu0 %v293_v7 }
 0x110   : > { %1199 = vmatmul.mubr.bf16.gmra.mxu0 %v292_v15 }
 0x158   : > { %v904_v51 = vpop.f32.mrf.mxu0 }
 0x159   : > { %v1017_v8 = vpop.f32.mrf.mxu1 }
 0x15a   : > { %v906_v10 = vpop.f32.mrf.mxu0 }
 0x15b   : > { %v1019_v18 = vpop.f32.mrf.mxu1  ;;  %v3736_v20 = vpack.c.bf16 %v906_v10, %v904_v51 }
 0x15c   : > { %v3737_v21 = vpack.c.bf16 %v1019_v18, %v1017_v8  ;;  %v908_v22 = vpop.f32.mrf.mxu0 }
 0x15d   : > { %v1021_v23 = vpop.f32.mrf.mxu1  ;;  %1497 = vst [vmem:[#allocation2] sm:$0xff] %v3736_v20 }
 0x15e   : > { %1498 = vst [vmem:[#allocation2 + $0x8] sm:$0xff] %v3737_v21  ;;  %v910_v24 = vpop.f32.mrf.mxu0 }
 0x15f   : > { %v1023_v25 = vpop.f32.mrf.mxu1  ;;  %v3739_v26 = vpack.c.bf16 %v910_v24, %v908_v22 }
 0x160   : > { %v3740_v27 = vpack.c.bf16 %v1023_v25, %v1021_v23  ;;  %v914_v28 = vpop.f32.mrf.mxu0 }
 0x161   : > { %v1027_v29 = vpop.f32.mrf.mxu1  ;;  %1500 = vst [vmem:[#allocation2 + $0x18] sm:$0xff] %v3739_v26 }
 0x162   : > { %1501 = vst [vmem:[#allocation2 + $0x20] sm:$0xff] %v3740_v27  ;;  %v916_v30 = vpop.f32.mrf.mxu0 }
 0x163   : > { %v1029_v31 = vpop.f32.mrf.mxu1  ;;  %v3742_v32 = vpack.c.bf16 %v916_v30, %v914_v28 }
 0x164   : > { %v3743_v33 = vpack.c.bf16 %v1029_v31, %v1027_v29  ;;  %v918_v34 = vpop.f32.mrf.mxu0 }
 0x165   : > { %v1031_v35 = vpop.f32.mrf.mxu1  ;;  %1503 = vst [vmem:[#allocation2 + $0x30] sm:$0xff] %v3742_v32 }
 0x166   : > { %1504 = vst [vmem:[#allocation2 + $0x38] sm:$0xff] %v3743_v33  ;;  %v920_v36 = vpop.f32.mrf.mxu0 }
 0x167   : > { %v1033_v37 = vpop.f32.mrf.mxu1  ;;  %v3745_v38 = vpack.c.bf16 %v920_v36, %v918_v34 }
 0x168   : > { %v3746_v39 = vpack.c.bf16 %v1033_v37, %v1031_v35  ;;  %v924_v40 = vpop.f32.mrf.mxu0  ;;  %v4221_v42 = vld [vmem:[#allocation2] ss:$24 sps:$4 sm:$0xff]  }
 0x169   : > { %v1037_v41 = vpop.f32.mrf.mxu1  ;;  %1506 = vst [vmem:[#allocation2 + $0x48] sm:$0xff] %v3745_v38  ;;  %3865 = vmatprep.mubr.bf16.mxu1 %v4221_v42 }
 0x16a   : > { %1507 = vst [vmem:[#allocation2 + $0x50] sm:$0xff] %v3746_v39  ;;  %v926_v43 = vpop.f32.mrf.mxu0 }
 0x16b   : > { %v1039_v44 = vpop.f32.mrf.mxu1  ;;  %v3748_v45 = vpack.c.bf16 %v926_v43, %v924_v40 }
 0x16c   : > { %v3749_v46 = vpack.c.bf16 %v1039_v44, %v1037_v41  ;;  %v928_v47 = vpop.f32.mrf.mxu0 }
 0x16d   : > { %v1041_v48 = vpop.f32.mrf.mxu1  ;;  %1509 = vst [vmem:[#allocation2 + $0x60] sm:$0xff] %v3748_v45 }
 0x16e   : > { %1510 = vst [vmem:[#allocation2 + $0x68] sm:$0xff] %v3749_v46  ;;  %v930_v49 = vpop.f32.mrf.mxu0 }
 0x16f   : > { %v1043_v50 = vpop.f32.mrf.mxu1  ;;  %v3751_v52 = vpack.c.bf16 %v930_v49, %v928_v47 }
 0x170   : > { %v3752_v53 = vpack.c.bf16 %v1043_v50, %v1041_v48  ;;  %v934_v54 = vpop.f32.mrf.mxu0 }
 0x171   : > { %v1047_v55 = vpop.f32.mrf.mxu1  ;;  %1512 = vst [vmem:[#allocation2 + $0x78] sm:$0xff] %v3751_v52 }
 0x172   : > { %1513 = vst [vmem:[#allocation2 + $0x80] sm:$0xff] %v3752_v53  ;;  %v936_v56 = vpop.f32.mrf.mxu0 }
 0x173   : > { %v1049_v57 = vpop.f32.mrf.mxu1  ;;  %v3754_v58 = vpack.c.bf16 %v936_v56, %v934_v54 }
 0x174   : > { %v3755_v59 = vpack.c.bf16 %v1049_v57, %v1047_v55  ;;  %v938_v60 = vpop.f32.mrf.mxu0 }
 0x175   : > { %v1051_v61 = vpop.f32.mrf.mxu1  ;;  %1515 = vst [vmem:[#allocation2 + $0x90] sm:$0xff] %v3754_v58 }
 0x176   : > { %1516 = vst [vmem:[#allocation2 + $0x98] sm:$0xff] %v3755_v59  ;;  %v940_v62 = vpop.f32.mrf.mxu0 }
 0x177   : > { %v1053_v63 = vpop.f32.mrf.mxu1  ;;  %v3757_v0 = vpack.c.bf16 %v940_v62, %v938_v60 }
 0x178   : > { %v3758_v1 = vpack.c.bf16 %v1053_v63, %v1051_v61  ;;  %v944_v2 = vpop.f32.mrf.mxu0 }
 0x179   : > { %v1057_v3 = vpop.f32.mrf.mxu1  ;;  %1518 = vst [vmem:[#allocation2 + $0xa8] sm:$0xff] %v3757_v0 }
 0x17a   : > { %1519 = vst [vmem:[#allocation2 + $0xb0] sm:$0xff] %v3758_v1  ;;  %v946_v4 = vpop.f32.mrf.mxu0 }
 0x17b   : > { %v1059_v5 = vpop.f32.mrf.mxu1  ;;  %v3760_v6 = vpack.c.bf16 %v946_v4, %v944_v2 }
 0x17c   : > { %v3761_v7 = vpack.c.bf16 %v1059_v5, %v1057_v3  ;;  %v948_v9 = vpop.f32.mrf.mxu0 }
 0x17d   : > { %v1061_v11 = vpop.f32.mrf.mxu1  ;;  %1521 = vst [vmem:[#allocation2 + $0xc0] sm:$0xff] %v3760_v6 }
 0x17e   : > { %1522 = vst [vmem:[#allocation2 + $0xc8] sm:$0xff] %v3761_v7  ;;  %v950_v12 = vpop.f32.mrf.mxu0 }
 0x17f   : > { %v1063_v13 = vpop.f32.mrf.mxu1  ;;  %v3763_v14 = vpack.c.bf16 %v950_v12, %v948_v9 }
 0x180   : > { %v3764_v15 = vpack.c.bf16 %v1063_v13, %v1061_v11  ;;  %v954_v16 = vpop.f32.mrf.mxu0 }
 0x181   : > { %v1067_v17 = vpop.f32.mrf.mxu1  ;;  %1524 = vst [vmem:[#allocation2 + $0xd8] sm:$0xff] %v3763_v14 }
 0x182   : > { %1525 = vst [vmem:[#allocation2 + $0xe0] sm:$0xff] %v3764_v15  ;;  %v956_v19 = vpop.f32.mrf.mxu0 }
 0x183   : > { %v1069_v51 = vpop.f32.mrf.mxu1  ;;  %v3766_v8 = vpack.c.bf16 %v956_v19, %v954_v16  ;;  %v4217_v19 = vld [vmem:[#allocation2 + $0x98] ss:$24 sps:$4 sm:$0xff]  }
 0x184   : > { %v3767_v10 = vpack.c.bf16 %v1069_v51, %v1067_v17  ;;  %v958_v18 = vpop.f32.mrf.mxu0 }
 0x185   : > { %v1071_v20 = vpop.f32.mrf.mxu1  ;;  %1527 = vst [vmem:[#allocation2 + $0xf0] sm:$0xff] %v3766_v8 }
 0x186   : > { %1528 = vst [vmem:[#allocation2 + $0xf8] sm:$0xff] %v3767_v10  ;;  %v960_v21 = vpop.f32.mrf.mxu0 }
 0x187   : > { %v1073_v22 = vpop.f32.mrf.mxu1  ;;  %v3769_v23 = vpack.c.bf16 %v960_v21, %v958_v18 }
 0x188   : > { %v3770_v24 = vpack.c.bf16 %v1073_v22, %v1071_v20  ;;  %v964_v25 = vpop.f32.mrf.mxu0  ;;  %v4218_v22 = vld [vmem:[#allocation2 + $0x68] ss:$24 sps:$4 sm:$0xff]  }
 0x189   : > { %v1077_v26 = vpop.f32.mrf.mxu1  ;;  %1530 = vst [vmem:[#allocation2 + $0x108] sm:$0xff] %v3769_v23  ;;  %v4216_v11 = vld [vmem:[#allocation2 + $0xc8] ss:$24 sps:$4 sm:$0xff]  }
 0x18a   : > { %1531 = vst [vmem:[#allocation2 + $0x110] sm:$0xff] %v3770_v24  ;;  %v966_v27 = vpop.f32.mrf.mxu0 }
 0x18b   : > { %v1079_v28 = vpop.f32.mrf.mxu1  ;;  %v3772_v29 = vpack.c.bf16 %v966_v27, %v964_v25 }
 0x18c   : > { %v3773_v30 = vpack.c.bf16 %v1079_v28, %v1077_v26  ;;  %v968_v31 = vpop.f32.mrf.mxu0 }
 0x18d   : > { %v1081_v32 = vpop.f32.mrf.mxu1  ;;  %1533 = vst [vmem:[#allocation2 + $0x120] sm:$0xff] %v3772_v29  ;;  %v4219_v29 = vld [vmem:[#allocation2 + $0x38] ss:$24 sps:$4 sm:$0xff]  }
 0x18e   : > { %1534 = vst [vmem:[#allocation2 + $0x128] sm:$0xff] %v3773_v30  ;;  %v970_v33 = vpop.f32.mrf.mxu0 }
 0x18f   : > { %v1083_v34 = vpop.f32.mrf.mxu1  ;;  %v3775_v35 = vpack.c.bf16 %v970_v33, %v968_v31 }
 0x190   : > { %v3776_v36 = vpack.c.bf16 %v1083_v34, %v1081_v32  ;;  %v974_v37 = vpop.f32.mrf.mxu0 }
 0x191   : > { %v1087_v38 = vpop.f32.mrf.mxu1  ;;  %1536 = vst [vmem:[#allocation2 + $0x138] sm:$0xff] %v3775_v35  ;;  %v4215_v2 = vld [vmem:[#allocation2 + $0xf8] ss:$24 sps:$4 sm:$0xff]  }
 0x192   : > { %1537 = vst [vmem:[#allocation2 + $0x140] sm:$0xff] %v3776_v36  ;;  %v976_v39 = vpop.f32.mrf.mxu0  ;;  %v4220_v36 = vld [vmem:[#allocation2 + $0x8] ss:$24 sps:$4 sm:$0xff]  }
 0x193   : > { %v1089_v40 = vpop.f32.mrf.mxu1  ;;  %v3778_v41 = vpack.c.bf16 %v976_v39, %v974_v37 }
 0x194   : > { %v3779_v42 = vpack.c.bf16 %v1089_v40, %v1087_v38  ;;  %v978_v43 = vpop.f32.mrf.mxu0 }
 0x195   : > { %v1091_v44 = vpop.f32.mrf.mxu1  ;;  %1539 = vst [vmem:[#allocation2 + $0x150] sm:$0xff] %v3778_v41  ;;  %v4222_v41 = vld [vmem:[#allocation2 + $0x30] ss:$24 sps:$4 sm:$0xff]  }
 0x196   : > { %1540 = vst [vmem:[#allocation2 + $0x158] sm:$0xff] %v3779_v42  ;;  %v980_v45 = vpop.f32.mrf.mxu0 }
 0x197   : > { %v1093_v46 = vpop.f32.mrf.mxu1  ;;  %v3781_v47 = vpack.c.bf16 %v980_v45, %v978_v43  ;;  %v4225_v43 = vld [vmem:[#allocation2 + $0x60] ss:$24 sps:$4 sm:$0xff]  }
 0x198   : > { %v3782_v48 = vpack.c.bf16 %v1093_v46, %v1091_v44  ;;  %v1130_v49 = vpop.f32.mrf.mxu0  ;;  %v4226_v46 = vld [vmem:[#allocation2 + $0x90] ss:$24 sps:$4 sm:$0xff]  }
 0x199   : > { %1542 = vst [vmem:[#allocation2 + $0x168] sm:$0xff] %v3781_v47  ;;  %v4214_v59 = vld [vmem:[#allocation2 + $0x128] ss:$24 sps:$4 sm:$0xff]  }
 0x19a   : > { %1543 = vst [vmem:[#allocation2 + $0x170] sm:$0xff] %v3782_v48  ;;  %v1132_v50 = vpop.f32.mrf.mxu0  ;;  %v4229_v47 = vld [vmem:[#allocation2 + $0xc0] ss:$24 sps:$4 sm:$0xff]  }
 0x19b   : > { %v3738_v52 = vpack.c.bf16 %v1132_v50, %v1130_v49  ;;  %v4230_v50 = vld [vmem:[#allocation2 + $0xf0] ss:$24 sps:$4 sm:$0xff]  }
 0x19c   : > { %v1134_v53 = vpop.f32.mrf.mxu0 }
 0x19d   : > { %1499 = vst [vmem:[#allocation2 + $0x10] sm:$0xff] %v3738_v52  ;;  %v4233_v52 = vld [vmem:[#allocation2 + $0x120] ss:$24 sps:$4 sm:$0xff]  }
 0x19e   : > { %v1136_v54 = vpop.f32.mrf.mxu0 }
 0x19f   : > { %v3741_v55 = vpack.c.bf16 %v1136_v54, %v1134_v53 }
 0x1a0   : > { %v1140_v56 = vpop.f32.mrf.mxu0 }
 0x1a1   : > { %v4213_v57 = vld [vmem:[#allocation2 + $0x158] ss:$24 sps:$4 sm:$0xff]   ;;  %1502 = vst [vmem:[#allocation2 + $0x28] sm:$0xff] %v3741_v55 }
 0x1a2   : > { %v1142_v58 = vpop.f32.mrf.mxu0  ;;  %3849 = vmatprep.subr.bf16.mxu1 %v4213_v57  ;;  %v4234_v55 = vld [vmem:[#allocation2 + $0x150] ss:$24 sps:$4 sm:$0xff]  }
 0x1a3   : > { %v3744_v60 = vpack.c.bf16 %v1142_v58, %v1140_v56  ;;  %3850 = vmatpush3.bf16.xpose.msra.mxu1 %v4213_v57  ;;  %v4855_v57 = vld [vmem:[#allocation2 + $0x15c] ss:$24 sps:$4 sm:$0xff]  }
 0x1a4   : > { %v1144_v61 = vpop.f32.mrf.mxu0  ;;  %3851 = vmatprep.subr.bf16.mxu1 %v4214_v59 }
 0x1a5   : > { %1505 = vst [vmem:[#allocation2 + $0x40] sm:$0xff] %v3744_v60 }
 0x1a6   : > { %v1146_v62 = vpop.f32.mrf.mxu0 }
 0x1a7   : > { %v3747_v63 = vpack.c.bf16 %v1146_v62, %v1144_v61 }
 0x1a8   : > { %v1150_v0 = vpop.f32.mrf.mxu0  ;;  %v4236_v56 = vld [vmem:[#allocation2 + $0x10] ss:$24 sps:$4 sm:$0xff]  }
 0x1a9   : > { %1508 = vst [vmem:[#allocation2 + $0x58] sm:$0xff] %v3747_v63 }
 0x1aa   : > { %v1152_v1 = vpop.f32.mrf.mxu0 }
 0x1ab   : > { %v3750_v3 = vpack.c.bf16 %v1152_v1, %v1150_v0  ;;  %3852 = vmatpush3.bf16.xpose.msra.mxu1 %v4214_v59 }
 0x1ac   : > { %v1154_v4 = vpop.f32.mrf.mxu0  ;;  %3853 = vmatprep.subr.bf16.mxu1 %v4215_v2 }
 0x1ad   : > { %1511 = vst [vmem:[#allocation2 + $0x70] sm:$0xff] %v3750_v3 }
 0x1ae   : > { %v1156_v5 = vpop.f32.mrf.mxu0 }
 0x1af   : > { %v3753_v6 = vpack.c.bf16 %v1156_v5, %v1154_v4 }
 0x1b0   : > { %v1160_v7 = vpop.f32.mrf.mxu0  ;;  %v4235_v54 = vld [vmem:[#allocation2 + $0x40] ss:$24 sps:$4 sm:$0xff]  }
 0x1b1   : > { %1514 = vst [vmem:[#allocation2 + $0x88] sm:$0xff] %v3753_v6 }
 0x1b2   : > { %v1162_v9 = vpop.f32.mrf.mxu0 }
 0x1b3   : > { %v3756_v12 = vpack.c.bf16 %v1162_v9, %v1160_v7  ;;  %3854 = vmatpush3.bf16.xpose.msra.mxu1 %v4215_v2 }
 0x1b4   : > { %v1164_v13 = vpop.f32.mrf.mxu0  ;;  %3855 = vmatprep.subr.bf16.mxu1 %v4216_v11 }
 0x1b5   : > { %1517 = vst [vmem:[#allocation2 + $0xa0] sm:$0xff] %v3756_v12  ;;  %v4238_v12 = vld [vmem:[#allocation9 + $0x70] ss:$8 sps:$4 sm:$0xff]  }
 0x1b6   : > { %v1166_v14 = vpop.f32.mrf.mxu0 }
 0x1b7   : > { %v3759_v15 = vpack.c.bf16 %v1166_v14, %v1164_v13  ;;  %v4240_v13 = vld [vmem:[#allocation9 + $0x74] ss:$8 sps:$4 sm:$0xff]   ;;  %v4243_v14 = vld [vmem:[#allocation9 + $0x64] ss:$8 sps:$4 sm:$0xff]  }
 0x1b8   : > { %v1170_v16 = vpop.f32.mrf.mxu0  ;;  %v4232_v53 = vld [vmem:[#allocation2 + $0x70] ss:$24 sps:$4 sm:$0xff]   ;;  %2251 = vmatprep.subr.bf16.mxu0 %v4240_v13 }
 0x1b9   : > { %1520 = vst [vmem:[#allocation2 + $0xb8] sm:$0xff] %v3759_v15  ;;  %2252 = vmatpush1.bf16.msra.mxu0 %v4238_v12  ;;  %v4241_v15 = vld [vmem:[#allocation9 + $0x60] ss:$8 sps:$4 sm:$0xff]  }
 0x1ba   : > { %v1172_v17 = vpop.f32.mrf.mxu0  ;;  %2253 = vmatprep.subr.bf16.mxu0 %v4243_v14 }
 0x1bb   : > { %v3762_v51 = vpack.c.bf16 %v1172_v17, %v1170_v16  ;;  %3856 = vmatpush3.bf16.xpose.msra.mxu1 %v4216_v11  ;;  %v4246_v16 = vld [vmem:[#allocation9 + $0x54] ss:$8 sps:$4 sm:$0xff]   ;;  %v4244_v17 = vld [vmem:[#allocation9 + $0x50] ss:$8 sps:$4 sm:$0xff]  }
 0x1bc   : > { %v1174_v8 = vpop.f32.mrf.mxu0  ;;  %3857 = vmatprep.subr.bf16.mxu1 %v4217_v19 }
 0x1bd   : > { %1523 = vst [vmem:[#allocation2 + $0xd0] sm:$0xff] %v3762_v51  ;;  %2254 = vmatpush1.bf16.msra.mxu0 %v4241_v15  ;;  %v4247_v51 = vld [vmem:[#allocation9 + $0x40] ss:$8 sps:$4 sm:$0xff]  }
 0x1be   : > { %v1176_v10 = vpop.f32.mrf.mxu0  ;;  %2255 = vmatprep.subr.bf16.mxu0 %v4246_v16 }
 0x1bf   : > { %v3765_v18 = vpack.c.bf16 %v1176_v10, %v1174_v8  ;;  %v4252_v8 = vld [vmem:[#allocation9 + $0x34] ss:$8 sps:$4 sm:$0xff]   ;;  %v4250_v10 = vld [vmem:[#allocation9 + $0x30] ss:$8 sps:$4 sm:$0xff]  }
 0x1c0   : > { %v1180_v20 = vpop.f32.mrf.mxu0  ;;  %v4231_v49 = vld [vmem:[#allocation2 + $0xa0] ss:$24 sps:$4 sm:$0xff]  }
 0x1c1   : > { %1526 = vst [vmem:[#allocation2 + $0xe8] sm:$0xff] %v3765_v18  ;;  %2256 = vmatpush1.bf16.msra.mxu0 %v4244_v17  ;;  %v4255_v18 = vld [vmem:[#allocation9 + $0x24] ss:$8 sps:$4 sm:$0xff]  }
 0x1c2   : > { %v1182_v21 = vpop.f32.mrf.mxu0 }
 0x1c3   : > { %v3768_v23 = vpack.c.bf16 %v1182_v21, %v1180_v20  ;;  %3858 = vmatpush3.bf16.xpose.msra.mxu1 %v4217_v19  ;;  %v4249_v19 = vld [vmem:[#allocation9 + $0x44] ss:$8 sps:$4 sm:$0xff]   ;;  %v4253_v20 = vld [vmem:[#allocation9 + $0x20] ss:$8 sps:$4 sm:$0xff]   ;;  %v4258_v21 = vld [vmem:[#allocation9 + $0x14] ss:$8 sps:$4 sm:$0xff]  }
 0x1c4   : > { %v1184_v24 = vpop.f32.mrf.mxu0  ;;  %3859 = vmatprep.subr.bf16.mxu1 %v4218_v22  ;;  %2257 = vmatprep.subr.bf16.mxu0 %v4249_v19 }
 0x1c5   : > { %1529 = vst [vmem:[#allocation2 + $0x100] sm:$0xff] %v3768_v23  ;;  %2258 = vmatpush1.bf16.msra.mxu0 %v4247_v51  ;;  %v4261_v23 = vld [vmem:[#allocation9 + $0x4] ss:$8 sps:$4 sm:$0xff]  }
 0x1c6   : > { %v1186_v25 = vpop.f32.mrf.mxu0  ;;  %2259 = vmatprep.subr.bf16.mxu0 %v4252_v8 }
 0x1c7   : > { %v3771_v26 = vpack.c.bf16 %v1186_v25, %v1184_v24  ;;  %v4259_v24 = vld [vmem:[#allocation9] ss:$8 sps:$4 sm:$0xff]  }
 0x1c8   : > { %v1190_v27 = vpop.f32.mrf.mxu0  ;;  %v4228_v48 = vld [vmem:[#allocation2 + $0xd0] ss:$24 sps:$4 sm:$0xff]  }
 0x1c9   : > { %1532 = vst [vmem:[#allocation2 + $0x118] sm:$0xff] %v3771_v26  ;;  %2260 = vmatpush1.bf16.msra.mxu0 %v4250_v10 }
 0x1ca   : > { %v1192_v28 = vpop.f32.mrf.mxu0  ;;  %2261 = vmatprep.subr.bf16.mxu0 %v4255_v18 }
 0x1cb   : > { %v3774_v30 = vpack.c.bf16 %v1192_v28, %v1190_v27  ;;  %3860 = vmatpush3.bf16.xpose.msra.mxu1 %v4218_v22  ;;  %v4256_v22 = vld [vmem:[#allocation9 + $0x10] ss:$8 sps:$4 sm:$0xff]  }
 0x1cc   : > { %v1194_v31 = vpop.f32.mrf.mxu0  ;;  %3861 = vmatprep.subr.bf16.mxu1 %v4219_v29 }
 0x1cd   : > { %1535 = vst [vmem:[#allocation2 + $0x130] sm:$0xff] %v3774_v30  ;;  %2262 = vmatpush1.bf16.msra.mxu0 %v4253_v20 }
 0x1ce   : > { %v1196_v32 = vpop.f32.mrf.mxu0  ;;  %2263 = vmatprep.subr.bf16.mxu0 %v4258_v21 }
 0x1cf   : > { %v3777_v33 = vpack.c.bf16 %v1196_v32, %v1194_v31 }
 0x1d0   : > { %v1200_v34 = vpop.f32.mrf.mxu0  ;;  %v4227_v45 = vld [vmem:[#allocation2 + $0x100] ss:$24 sps:$4 sm:$0xff]  }
 0x1d1   : > { %1538 = vst [vmem:[#allocation2 + $0x148] sm:$0xff] %v3777_v33  ;;  %2264 = vmatpush1.bf16.msra.mxu0 %v4256_v22 }
 0x1d2   : > { %v1202_v35 = vpop.f32.mrf.mxu0  ;;  %2265 = vmatprep.subr.bf16.mxu0 %v4261_v23 }
 0x1d3   : > { %v3780_v37 = vpack.c.bf16 %v1202_v35, %v1200_v34  ;;  %3862 = vmatpush3.bf16.xpose.msra.mxu1 %v4219_v29 }
 0x1d4   : > { %v1204_v38 = vpop.f32.mrf.mxu0  ;;  %3863 = vmatprep.subr.bf16.mxu1 %v4220_v36 }
 0x1d5   : > { %1541 = vst [vmem:[#allocation2 + $0x160] sm:$0xff] %v3780_v37  ;;  %2266 = vmatpush1.bf16.msra.mxu0 %v4259_v24 }
 0x1d6   : > { %v1206_v39 = vpop.f32.mrf.mxu0 }
 0x1d7   : > { %v3783_v40 = vpack.c.bf16 %v1206_v39, %v1204_v38 }
 0x1d8   : > { %v4224_v42 = vld [vmem:[#allocation2 + $0x130] ss:$24 sps:$4 sm:$0xff]  }
 0x1d9   : > { %1544 = vst [vmem:[#allocation2 + $0x178] sm:$0xff] %v3783_v40 }
 0x1db   : > { %3864 = vmatpush3.bf16.xpose.msra.mxu1 %v4220_v36 }
 0x1e0   : > { %v4223_v44 = vld [vmem:[#allocation2 + $0x160] ss:$24 sps:$4 sm:$0xff]   ;;  %v4906_v25 = vld [vmem:[#allocation2 + $0x164] ss:$24 sps:$4 sm:$0xff]  }
 0x1e1   : > { %3881 = vmatprep.subr.bf16.mxu1 %v4223_v44  ;;  %3945 = vmatprep.subr.bf16.mxu0 %v4906_v25 }
 0x1e2   : > { %3866 = vmatmul.mubr.bf16.vlgmr.msra.gmra.mxu1 %v4222_v41 }
 0x1e3   : > { %3882 = vmatpush3.bf16.msra.mxu1 %v4223_v44  ;;  %3869 = vmatprep.mubr.bf16.mxu1 %v4225_v43 }
 0x1e4   : > { %3883 = vmatprep.subr.bf16.mxu1 %v4224_v42 }
 0x1e7   : > { %3884 = vmatpush3.bf16.msra.mxu1 %v4224_v42 }
 0x1e8   : > { %3885 = vmatprep.subr.bf16.mxu1 %v4227_v45 }
 0x1ea   : > { %3870 = vmatmul.mubr.bf16.gmra.mxu1 %v4226_v46 }
 0x1eb   : > { %3886 = vmatpush3.bf16.msra.mxu1 %v4227_v45  ;;  %3873 = vmatprep.mubr.bf16.mxu1 %v4229_v47 }
 0x1ec   : > { %3887 = vmatprep.subr.bf16.mxu1 %v4228_v48 }
 0x1ef   : > { %3888 = vmatpush3.bf16.msra.mxu1 %v4228_v48 }
 0x1f0   : > { %3889 = vmatprep.subr.bf16.mxu1 %v4231_v49 }
 0x1f2   : > { %3874 = vmatmul.mubr.bf16.gmra.mxu1 %v4230_v50 }
 0x1f3   : > { %3890 = vmatpush3.bf16.msra.mxu1 %v4231_v49  ;;  %3877 = vmatprep.mubr.bf16.mxu1 %v4233_v52 }
 0x1f4   : > { %3891 = vmatprep.subr.bf16.mxu1 %v4232_v53 }
 0x1f7   : > { %3892 = vmatpush3.bf16.msra.mxu1 %v4232_v53 }
 0x1f8   : > { %3893 = vmatprep.subr.bf16.mxu1 %v4235_v54 }
 0x1fa   : > { %3878 = vmatmul.mubr.bf16.gmra.mxu1 %v4234_v55 }
 0x1fb   : > { %3894 = vmatpush3.bf16.msra.mxu1 %v4235_v54 }
 0x1fc   : > { %3895 = vmatprep.subr.bf16.mxu1 %v4236_v56 }
 0x1ff   : > { %3896 = vmatpush3.bf16.msra.mxu1 %v4236_v56 }
 0x200   : > { %3913 = vmatprep.subr.bf16.mxu1 %v4855_v57 }
 0x2a2   : > { %v4858_v58 = vpop.f32.mrf.mxu1 }
 0x2a3   : > { %1822 = vmax.xlane.f32.xlu1 %v4858_v58 }
 0x2a4   : > { %v4861_v59 = vpop.f32.mrf.mxu1 }
 0x2a5   : > { %1818 = vmax.xlane.f32.xlu0 %v4861_v59 }
 0x2a6   : > { %v4864_v60 = vpop.f32.mrf.mxu1 }
 0x2a7   : > { %1824 = vmax.xlane.f32.xlu1 %v4864_v60 }
 0x2a8   : > { %v4867_v61 = vpop.f32.mrf.mxu1 }
 0x2a9   : > { %1820 = vmax.xlane.f32.xlu0 %v4867_v61 }
 0x2aa   : > { %v4870_v62 = vpop.f32.mrf.mxu1 }
 0x2ac   : > { %v4872_v63 = vpop.f32.mrf.mxu1 }
 0x2ad   : > { %1826 = vmax.xlane.f32.xlu0 %v4872_v63 }
 0x2ae   : > { %v4875_v0 = vpop.f32.mrf.mxu1 }
 0x2b0   : > { %v4877_v1 = vpop.f32.mrf.mxu1 }
 0x2b1   : > { %1830 = vmax.xlane.f32.xlu0 %v4870_v62  ;;  %1828 = vmax.xlane.f32.xlu1 %v4877_v1 }
 0x2b2   : > { %v4881_v2 = vpop.f32.mrf.mxu1 }
 0x2b4   : > { %v4883_v3 = vpop.f32.mrf.mxu1 }
 0x2b5   : > { %1832 = vmax.xlane.f32.xlu1 %v4875_v0  ;;  %1834 = vmax.xlane.f32.xlu0 %v4883_v3 }
 0x2b6   : > { %v4887_v4 = vpop.f32.mrf.mxu1 }
 0x2b8   : > { %v4889_v5 = vpop.f32.mrf.mxu1 }
 0x2b9   : > { %1838 = vmax.xlane.f32.xlu0 %v4881_v2  ;;  %1836 = vmax.xlane.f32.xlu1 %v4889_v5 }
 0x2ba   : > { %v4893_v6 = vpop.f32.mrf.mxu1 }
 0x2bc   : > { %v4895_v7 = vpop.f32.mrf.mxu1 }
 0x2bd   : > { %1840 = vmax.xlane.f32.xlu1 %v4887_v4  ;;  %1842 = vmax.xlane.f32.xlu0 %v4895_v7 }
 0x2be   : > { %v4899_v9 = vpop.f32.mrf.mxu1 }
 0x2c0   : > { %v4901_v11 = vpop.f32.mrf.mxu1 }
 0x2c1   : > { %1846 = vmax.xlane.f32.xlu0 %v4893_v6  ;;  %1844 = vmax.xlane.f32.xlu1 %v4901_v11 }
 0x2c5   : > { %1848 = vmax.xlane.f32.xlu1 %v4899_v9 }
 0x32c   : > { %v1823_v26 = vpop.xlane.xlu1 %1822 }
 0x32d   : > { %v1852_v27 = vsub.f32 %v4858_v58, %v1823_v26 }
 0x32e   : > { %v1819_v28 = vpop.xlane.xlu0 %1818 }
 0x32f   : > { %v1850_v29 = vsub.f32 %v4861_v59, %v1819_v28  ;;  %v1870_v32 = vmul.f32 1.442695, %v1852_v27 }
 0x330   : > { %v1825_v30 = vpop.xlane.xlu1 %1824 }
 0x331   : > { %v1866_v31 = vmul.f32 1.442695, %v1850_v29  ;;  %v1853_v33 = vsub.f32 %v4864_v60, %v1825_v30 }
 0x332   : > { %v1821_v34 = vpop.xlane.xlu0 %1820 }
 0x333   : > { %4309 = vpow2.f32 %v1866_v31  ;;  %v1851_v35 = vsub.f32 %v4867_v61, %v1821_v34  ;;  %v1872_v37 = vmul.f32 1.442695, %v1853_v33 }
 0x334   : > { %4311 = vpow2.f32 %v1870_v32 }
 0x335   : > { %v1868_v36 = vmul.f32 1.442695, %v1851_v35 }
 0x336   : > { %v1827_v38 = vpop.xlane.xlu0 %1826 }
 0x337   : > { %4313 = vpow2.f32 %v1868_v36  ;;  %v1854_v39 = vsub.f32 %v4872_v63, %v1827_v38 }
 0x338   : > { %4315 = vpow2.f32 %v1872_v37 }
 0x339   : > { %v1874_v40 = vmul.f32 1.442695, %v1854_v39 }
 0x33a   : > { %v1831_v41 = vpop.xlane.xlu0 %1830  ;;  %v1829_v42 = vpop.xlane.xlu1 %1828 }
 0x33b   : > { %4317 = vpow2.f32 %v1874_v40  ;;  %v1856_v43 = vsub.f32 %v4870_v62, %v1831_v41  ;;  %v1855_v44 = vsub.f32 %v4877_v1, %v1829_v42 }
 0x33d   : > { %v1878_v45 = vmul.f32 1.442695, %v1856_v43  ;;  %v1876_v46 = vmul.f32 1.442695, %v1855_v44 }
 0x33e   : > { %v1833_v47 = vpop.xlane.xlu1 %1832  ;;  %v1835_v48 = vpop.xlane.xlu0 %1834 }
 0x33f   : > { %4319 = vpow2.f32 %v1878_v45  ;;  %v1857_v49 = vsub.f32 %v4875_v0, %v1833_v47  ;;  %v1858_v50 = vsub.f32 %v4883_v3, %v1835_v48 }
 0x340   : > { %v4918_v52 = vpop.eup %4309  ;;  %4321 = vpow2.f32 %v1876_v46 }
 0x341   : > { %v1880_v53 = vmul.f32 1.442695, %v1857_v49  ;;  %v1882_v54 = vmul.f32 1.442695, %v1858_v50  ;;  %1898 = vadd.xlane.f32.xlu0 %v4918_v52  ;;  %v4921_v58 = vpop.eup %4311 }
 0x342   : > { %v1839_v55 = vpop.xlane.xlu0 %1838  ;;  %v1837_v56 = vpop.xlane.xlu1 %1836 }
 0x343   : > { %4323 = vpow2.f32 %v1880_v53  ;;  %v1860_v59 = vsub.f32 %v4881_v2, %v1839_v55  ;;  %v1859_v60 = vsub.f32 %v4889_v5, %v1837_v56 }
 0x344   : > { %v4925_v61 = vpop.eup %4313  ;;  %4325 = vpow2.f32 %v1882_v54  ;;  %v4263_v54 = vld [vmem:[#allocation2 + $0x12c] ss:$24 sps:$4 sm:$0xff]  }
 0x345   : > { %v1886_v62 = vmul.f32 1.442695, %v1860_v59  ;;  %v1884_v63 = vmul.f32 1.442695, %v1859_v60  ;;  %1902 = vadd.xlane.f32.xlu0 %v4921_v58  ;;  %1900 = vadd.xlane.f32.xlu1 %v4925_v61  ;;  %v4929_v3 = vpop.eup %4315 }
 0x346   : > { %v1841_v0 = vpop.xlane.xlu1 %1840  ;;  %v1843_v1 = vpop.xlane.xlu0 %1842 }
 0x347   : > { %4327 = vpow2.f32 %v1886_v62  ;;  %v1861_v12 = vsub.f32 %v4887_v4, %v1841_v0  ;;  %v1862_v2 = vsub.f32 %v4895_v7, %v1843_v1 }
 0x348   : > { %v4933_v13 = vpop.eup %4317  ;;  %4329 = vpow2.f32 %v1884_v63 }
 0x349   : > { %v1888_v5 = vmul.f32 1.442695, %v1861_v12  ;;  %v1890_v14 = vmul.f32 1.442695, %v1862_v2  ;;  %1906 = vadd.xlane.f32.xlu0 %v4933_v13  ;;  %1904 = vadd.xlane.f32.xlu1 %v4929_v3 }
 0x34a   : > { %v1847_v15 = vpop.xlane.xlu0 %1846  ;;  %v1845_v16 = vpop.xlane.xlu1 %1844 }
 0x34b   : > { %4331 = vpow2.f32 %v1888_v5  ;;  %v1864_v17 = vsub.f32 %v4893_v6, %v1847_v15  ;;  %v1863_v19 = vsub.f32 %v4901_v11, %v1845_v16 }
 0x34c   : > { %v4939_v51 = vpop.eup %4319  ;;  %4333 = vpow2.f32 %v1890_v14 }
 0x34d   : > { %v4941_v4 = vpop.eup %4321  ;;  %v1894_v7 = vmul.f32 1.442695, %v1864_v17  ;;  %v1892_v8 = vmul.f32 1.442695, %v1863_v19  ;;  %1910 = vadd.xlane.f32.xlu0 %v4939_v51 }
 0x34e   : > { %1908 = vadd.xlane.f32.xlu1 %v4941_v4  ;;  %v1849_v10 = vpop.xlane.xlu1 %1848 }
 0x34f   : > { %4335 = vpow2.f32 %v1894_v7  ;;  %v1865_v18 = vsub.f32 %v4899_v9, %v1849_v10  ;;  %v4265_v10 = vld [vmem:[#allocation2 + $0xcc] ss:$24 sps:$4 sm:$0xff]  }
 0x350   : > { %v4946_v20 = vpop.eup %4323  ;;  %4337 = vpow2.f32 %v1892_v8 }
 0x351   : > { %v4948_v6 = vpop.eup %4325  ;;  %v1896_v11 = vmul.f32 1.442695, %v1865_v18 }
 0x352   : > { %1914 = vadd.xlane.f32.xlu0 %v4948_v6  ;;  %1912 = vadd.xlane.f32.xlu1 %v4946_v20 }
 0x353   : > { %4339 = vpow2.f32 %v1896_v11 }
 0x354   : > { %v4952_v21 = vpop.eup %4327 }
 0x355   : > { %v4954_v22 = vpop.eup %4329 }
 0x356   : > { %1918 = vadd.xlane.f32.xlu0 %v4952_v21  ;;  %1916 = vadd.xlane.f32.xlu1 %v4954_v22 }
 0x358   : > { %v4958_v9 = vpop.eup %4331 }
 0x359   : > { %v4960_v23 = vpop.eup %4333 }
 0x35a   : > { %1922 = vadd.xlane.f32.xlu0 %v4960_v23  ;;  %1920 = vadd.xlane.f32.xlu1 %v4958_v9 }
 0x35c   : > { %v4964_v24 = vpop.eup %4335 }
 0x35d   : > { %v4966_v26 = vpop.eup %4337 }
 0x35e   : > { %1926 = vadd.xlane.f32.xlu0 %v4964_v24  ;;  %1924 = vadd.xlane.f32.xlu1 %v4966_v26 }
 0x360   : > { %v4970_v27 = vpop.eup %4339 }
 0x362   : > { %1928 = vadd.xlane.f32.xlu1 %v4970_v27 }
 0x3ca   : > { %v1899_v28 = vpop.xlane.xlu0 %1898 }
 0x3cb   : > { %4341 = vrcp.f32 %v1899_v28  ;;  %v4267_v28 = vld [vmem:[#allocation2 + $0x4] ss:$24 sps:$4 sm:$0xff]  }
 0x3ce   : > { %v1903_v29 = vpop.xlane.xlu0 %1902  ;;  %v1901_v30 = vpop.xlane.xlu1 %1900 }
 0x3cf   : > { %4343 = vrcp.f32 %v1901_v30  ;;  %v4268_v30 = vld [vmem:[#allocation2 + $0x6c] ss:$24 sps:$4 sm:$0xff]  }
 0x3d0   : > { %4345 = vrcp.f32 %v1903_v29  ;;  %v4266_v29 = vld [vmem:[#allocation2 + $0x9c] ss:$24 sps:$4 sm:$0xff]  }
 0x3d2   : > { %v1907_v31 = vpop.xlane.xlu0 %1906  ;;  %v1905_v32 = vpop.xlane.xlu1 %1904 }
 0x3d3   : > { %4347 = vrcp.f32 %v1905_v32  ;;  %v4274_v32 = vld [vmem:[#allocation2 + $0xc4] ss:$24 sps:$4 sm:$0xff]  }
 0x3d4   : > { %4349 = vrcp.f32 %v1907_v31  ;;  %v4273_v31 = vld [vmem:[#allocation2 + $0x94] ss:$24 sps:$4 sm:$0xff]  }
 0x3d6   : > { %v1911_v33 = vpop.xlane.xlu0 %1910 }
 0x3d7   : > { %v1909_v34 = vpop.xlane.xlu1 %1908 }
 0x3d8   : > { %4351 = vrcp.f32 %v1909_v34  ;;  %v4342_v35 = vpop.eup %4341  ;;  %v4275_v34 = vld [vmem:[#allocation2 + $0xf4] ss:$24 sps:$4 sm:$0xff]  }
 0x3d9   : > { %4353 = vrcp.f32 %v1911_v33  ;;  %v1946_v39 = vmul.f32 %v4342_v35, %v4918_v52  ;;  %v4596_v33 = vmov 0   ;;  %v4276_v35 = vld [vmem:[#allocation2 + $0x124] ss:$24 sps:$4 sm:$0xff]  }
 0x3da   : > { %2283 = vmatprep.mubr.bf16.mxu0 %v4596_v33 }
 0x3db   : > { %v1915_v36 = vpop.xlane.xlu0 %1914  ;;  %v1913_v37 = vpop.xlane.xlu1 %1912 }
 0x3dc   : > { %v4344_v38 = vpop.eup %4343  ;;  %4355 = vrcp.f32 %v1913_v37 }
 0x3dd   : > { %v1947_v40 = vmul.f32 %v4344_v38, %v4925_v61  ;;  %v4346_v41 = vpop.eup %4345  ;;  %4357 = vrcp.f32 %v1915_v36  ;;  %v4277_v36 = vld [vmem:[#allocation2 + $0x154] ss:$24 sps:$4 sm:$0xff]  }
 0x3de   : > { %v1948_v46 = vmul.f32 %v4346_v41, %v4921_v58 }
 0x3df   : > { %v1919_v42 = vpop.xlane.xlu0 %1918  ;;  %v1917_v43 = vpop.xlane.xlu1 %1916  ;;  %v1962_v44 = vpack.c.bf16 %v1947_v40, %v1946_v39 }
 0x3e0   : > { %v4348_v45 = vpop.eup %4347  ;;  %4359 = vrcp.f32 %v1917_v43  ;;  %v4278_v43 = vld [vmem:[#allocation2 + $0x134] ss:$24 sps:$4 sm:$0xff]  }
 0x3e1   : > { %3897 = vmatprep.mubr.bf16.mxu1 %v1962_v44  ;;  %v1949_v47 = vmul.f32 %v4348_v45, %v4929_v3  ;;  %v4350_v48 = vpop.eup %4349  ;;  %4361 = vrcp.f32 %v1919_v42  ;;  %v4279_v45 = vld [vmem:[#allocation2 + $0x104] ss:$24 sps:$4 sm:$0xff]  }
 0x3e2   : > { %v1950_v55 = vmul.f32 %v4350_v48, %v4933_v13  ;;  %v4280_v48 = vld [vmem:[#allocation2 + $0xd4] ss:$24 sps:$4 sm:$0xff]  }
 0x3e3   : > { %v1923_v49 = vpop.xlane.xlu0 %1922  ;;  %v1921_v50 = vpop.xlane.xlu1 %1920  ;;  %v1963_v53 = vpack.c.bf16 %v1949_v47, %v1948_v46 }
 0x3e4   : > { %4363 = vrcp.f32 %v1921_v50  ;;  %v4281_v50 = vld [vmem:[#allocation2 + $0xa4] ss:$24 sps:$4 sm:$0xff]  }
 0x3e5   : > { %v4352_v52 = vpop.eup %4351  ;;  %3898 = vmatmul.mubr.bf16.vlgmr.msra.gmra.mxu1 %v1963_v53  ;;  %4365 = vrcp.f32 %v1923_v49 }
 0x3e6   : > { %v1951_v56 = vmul.f32 %v4352_v52, %v4941_v4  ;;  %3914 = vmatpush3.bf16.xpose.msra.mxu1 %v4855_v57  ;;  %v4354_v60 = vpop.eup %4353  ;;  %v4264_v57 = vld [vmem:[#allocation2 + $0xfc] ss:$24 sps:$4 sm:$0xff]  }
 0x3e7   : > { %v1927_v59 = vpop.xlane.xlu0 %1926  ;;  %v1925_v58 = vpop.xlane.xlu1 %1924  ;;  %3915 = vmatprep.subr.bf16.mxu1 %v4263_v54  ;;  %v1952_v0 = vmul.f32 %v4354_v60, %v4939_v51  ;;  %v4282_v52 = vld [vmem:[#allocation2 + $0x74] ss:$24 sps:$4 sm:$0xff]  }
 0x3e8   : > { %v1964_v61 = vpack.c.bf16 %v1951_v56, %v1950_v55  ;;  %4367 = vrcp.f32 %v1925_v58  ;;  %v4283_v55 = vld [vmem:[#allocation2 + $0x44] ss:$24 sps:$4 sm:$0xff]   ;;  %v4284_v58 = vld [vmem:[#allocation2 + $0x14] ss:$24 sps:$4 sm:$0xff]  }
 0x3e9   : > { %v4356_v62 = vpop.eup %4355  ;;  %4369 = vrcp.f32 %v1927_v59 }
 0x3ea   : > { %3901 = vmatprep.mubr.bf16.mxu1 %v1964_v61  ;;  %v1953_v1 = vmul.f32 %v4356_v62, %v4946_v20  ;;  %v4358_v3 = vpop.eup %4357 }
 0x3eb   : > { %v1929_v63 = vpop.xlane.xlu1 %1928  ;;  %v1954_v13 = vmul.f32 %v4358_v3, %v4948_v6 }
 0x3ec   : > { %4371 = vrcp.f32 %v1929_v63  ;;  %v1965_v12 = vpack.c.bf16 %v1953_v1, %v1952_v0 }
 0x3ed   : > { %v4360_v2 = vpop.eup %4359 }
 0x3ee   : > { %3902 = vmatmul.mubr.bf16.gmra.mxu1 %v1965_v12  ;;  %v1955_v5 = vmul.f32 %v4360_v2, %v4954_v22  ;;  %v4362_v14 = vpop.eup %4361 }
 0x3ef   : > { %3916 = vmatpush3.bf16.xpose.msra.mxu1 %v4263_v54  ;;  %v1956_v17 = vmul.f32 %v4362_v14, %v4952_v21 }
 0x3f0   : > { %3917 = vmatprep.subr.bf16.mxu1 %v4264_v57  ;;  %v1966_v15 = vpack.c.bf16 %v1955_v5, %v1954_v13 }
 0x3f1   : > { %v4364_v16 = vpop.eup %4363 }
 0x3f2   : > { %3905 = vmatprep.mubr.bf16.mxu1 %v1966_v15  ;;  %v1957_v19 = vmul.f32 %v4364_v16, %v4958_v9  ;;  %v4366_v51 = vpop.eup %4365 }
 0x3f3   : > { %v1958_v18 = vmul.f32 %v4366_v51, %v4960_v23  ;;  %v4269_v23 = vld [vmem:[#allocation2 + $0x3c] ss:$24 sps:$4 sm:$0xff]  }
 0x3f4   : > { %v1967_v4 = vpack.c.bf16 %v1957_v19, %v1956_v17 }
 0x3f5   : > { %v4368_v7 = vpop.eup %4367 }
 0x3f6   : > { %v4370_v8 = vpop.eup %4369  ;;  %3906 = vmatmul.mubr.bf16.gmra.mxu1 %v1967_v4  ;;  %v1959_v20 = vmul.f32 %v4368_v7, %v4966_v26  ;;  %v4270_v26 = vld [vmem:[#allocation2 + $0xc] ss:$24 sps:$4 sm:$0xff]  }
 0x3f7   : > { %3918 = vmatpush3.bf16.xpose.msra.mxu1 %v4264_v57  ;;  %v1960_v22 = vmul.f32 %v4370_v8, %v4964_v24  ;;  %v4271_v24 = vld [vmem:[#allocation2 + $0x34] ss:$24 sps:$4 sm:$0xff]  }
 0x3f8   : > { %3919 = vmatprep.subr.bf16.mxu1 %v4265_v10  ;;  %v1968_v11 = vpack.c.bf16 %v1959_v20, %v1958_v18 }
 0x3f9   : > { %v4372_v6 = vpop.eup %4371 }
 0x3fa   : > { %v1961_v21 = vmul.f32 %v4372_v6, %v4970_v27  ;;  %3909 = vmatprep.mubr.bf16.mxu1 %v1968_v11  ;;  %v4272_v27 = vld [vmem:[#allocation2 + $0x64] ss:$24 sps:$4 sm:$0xff]  }
 0x3fc   : > { %v1969_v9 = vpack.c.bf16 %v1961_v21, %v1960_v22 }
 0x3fe   : > { %3910 = vmatmul.mubr.bf16.gmra.mxu1 %v1969_v9 }
 0x3ff   : > { %3920 = vmatpush3.bf16.xpose.msra.mxu1 %v4265_v10  ;;  %3929 = vmatprep.mubr.bf16.mxu1 %v4267_v28 }
 0x400   : > { %3921 = vmatprep.subr.bf16.mxu1 %v4266_v29 }
 0x407   : > { %3922 = vmatpush3.bf16.xpose.msra.mxu1 %v4266_v29 }
 0x408   : > { %3923 = vmatprep.subr.bf16.mxu1 %v4268_v30 }
 0x40f   : > { %3924 = vmatpush3.bf16.xpose.msra.mxu1 %v4268_v30 }
 0x410   : > { %3925 = vmatprep.subr.bf16.mxu1 %v4269_v23 }
 0x417   : > { %3926 = vmatpush3.bf16.xpose.msra.mxu1 %v4269_v23 }
 0x418   : > { %3927 = vmatprep.subr.bf16.mxu1 %v4270_v26 }
 0x41f   : > { %3928 = vmatpush3.bf16.xpose.msra.mxu1 %v4270_v26 }
 0x426   : > { %3930 = vmatmul.mubr.bf16.vlgmr.msra.gmra.mxu1 %v4271_v24 }
 0x427   : > { %3933 = vmatprep.mubr.bf16.mxu1 %v4272_v27 }
 0x42e   : > { %3934 = vmatmul.mubr.bf16.gmra.mxu1 %v4273_v31 }
 0x42f   : > { %3937 = vmatprep.mubr.bf16.mxu1 %v4274_v32 }
 0x436   : > { %3938 = vmatmul.mubr.bf16.gmra.mxu1 %v4275_v34 }
 0x437   : > { %3941 = vmatprep.mubr.bf16.mxu1 %v4276_v35 }
 0x43e   : > { %3942 = vmatmul.mubr.bf16.gmra.mxu1 %v4277_v36 }
 0x43f   : > { %3154 = vmatprep.mubr.bf16.mxu1 %v4596_v33 }
 0x4a5   : > { %v3899_v37 = vpop.f32.mrf.mxu1 }
 0x4a7   : > { %v2052_v38 = vpop.f32.mrf.mxu1 }
 0x4a9   : > { %v3900_v39 = vpop.f32.mrf.mxu1 }
 0x4aa   : > { %v2148_v46 = vpack.c.bf16 %v3900_v39, %v3899_v37 }
 0x4ab   : > { %v2055_v40 = vpop.f32.mrf.mxu1 }
 0x4ac   : > { %v2147_v41 = vpack.c.bf16 %v2055_v40, %v2052_v38 }
 0x4ae   : > { %v3903_v42 = vpop.f32.mrf.mxu1  ;;  %2284 = vmatmul.mubr.bf16.vlgmr.msra.gmra.mxu0 %v2147_v41 }
 0x4af   : > { %3946 = vmatpush3.bf16.msra.mxu0 %v4906_v25  ;;  %2293 = vmatprep.mubr.bf16.mxu0 %v4596_v33 }
 0x4b0   : > { %3947 = vmatprep.subr.bf16.mxu0 %v4278_v43  ;;  %v2068_v44 = vpop.f32.mrf.mxu1 }
 0x4b2   : > { %v3904_v47 = vpop.f32.mrf.mxu1 }
 0x4b3   : > { %3948 = vmatpush3.bf16.msra.mxu0 %v4278_v43  ;;  %v2150_v56 = vpack.c.bf16 %v3904_v47, %v3903_v42 }
 0x4b4   : > { %3949 = vmatprep.subr.bf16.mxu0 %v4279_v45  ;;  %v2071_v49 = vpop.f32.mrf.mxu1 }
 0x4b5   : > { %v2149_v53 = vpack.c.bf16 %v2071_v49, %v2068_v44 }
 0x4b6   : > { %2294 = vmatmul.mubr.bf16.gmra.mxu0 %v2148_v46  ;;  %v3907_v25 = vpop.f32.mrf.mxu1 }
 0x4b7   : > { %3950 = vmatpush3.bf16.msra.mxu0 %v4279_v45  ;;  %2303 = vmatprep.mubr.bf16.mxu0 %v4596_v33 }
 0x4b8   : > { %3951 = vmatprep.subr.bf16.mxu0 %v4280_v48  ;;  %v2084_v54 = vpop.f32.mrf.mxu1 }
 0x4ba   : > { %v3908_v59 = vpop.f32.mrf.mxu1 }
 0x4bb   : > { %3952 = vmatpush3.bf16.msra.mxu0 %v4280_v48  ;;  %v2152_v0 = vpack.c.bf16 %v3908_v59, %v3907_v25 }
 0x4bc   : > { %3953 = vmatprep.subr.bf16.mxu0 %v4281_v50  ;;  %v2087_v60 = vpop.f32.mrf.mxu1 }
 0x4bd   : > { %v2151_v61 = vpack.c.bf16 %v2087_v60, %v2084_v54 }
 0x4be   : > { %2304 = vmatmul.mubr.bf16.gmra.mxu0 %v2149_v53  ;;  %v3911_v62 = vpop.f32.mrf.mxu1 }
 0x4bf   : > { %3954 = vmatpush3.bf16.msra.mxu0 %v4281_v50  ;;  %2313 = vmatprep.mubr.bf16.mxu0 %v4596_v33 }
 0x4c0   : > { %3955 = vmatprep.subr.bf16.mxu0 %v4282_v52  ;;  %v2100_v63 = vpop.f32.mrf.mxu1 }
 0x4c2   : > { %v3912_v1 = vpop.f32.mrf.mxu1 }
 0x4c3   : > { %3956 = vmatpush3.bf16.msra.mxu0 %v4282_v52  ;;  %v2154_v2 = vpack.c.bf16 %v3912_v1, %v3911_v62 }
 0x4c4   : > { %3957 = vmatprep.subr.bf16.mxu0 %v4283_v55  ;;  %v2103_v3 = vpop.f32.mrf.mxu1 }
 0x4c5   : > { %v2153_v12 = vpack.c.bf16 %v2103_v3, %v2100_v63 }
 0x4c6   : > { %2314 = vmatmul.mubr.bf16.gmra.mxu0 %v2150_v56 }
 0x4c7   : > { %3958 = vmatpush3.bf16.msra.mxu0 %v4283_v55  ;;  %2323 = vmatprep.mubr.bf16.mxu0 %v4596_v33 }
 0x4c8   : > { %3959 = vmatprep.subr.bf16.mxu0 %v4284_v58 }
 0x4cb   : > { %3960 = vmatpush3.bf16.msra.mxu0 %v4284_v58 }
 0x4ce   : > { %2324 = vmatmul.mubr.bf16.gmra.mxu0 %v2151_v61 }
 0x4cf   : > { %2333 = vmatprep.mubr.bf16.mxu0 %v4596_v33 }
 0x4d6   : > { %2334 = vmatmul.mubr.bf16.gmra.mxu0 %v2152_v0 }
 0x4d7   : > { %2343 = vmatprep.mubr.bf16.mxu0 %v4596_v33 }
 0x4de   : > { %2344 = vmatmul.mubr.bf16.gmra.mxu0 %v2153_v12 }
 0x4df   : > { %2353 = vmatprep.mubr.bf16.mxu0 %v4596_v33 }
 0x4e6   : > { %v3931_v57 = vpop.f32.mrf.mxu1  ;;  %2354 = vmatmul.mubr.bf16.gmra.mxu0 %v2154_v2 }
 0x4e8   : > { %v2606_v13 = vpop.f32.mrf.mxu1 }
 0x4e9   : > { %2669 = vmax.xlane.f32.xlu0 %v2606_v13 }
 0x4ea   : > { %v3932_v5 = vpop.f32.mrf.mxu1 }
 0x4ec   : > { %v2609_v14 = vpop.f32.mrf.mxu1 }
 0x4ed   : > { %2673 = vmax.xlane.f32.xlu0 %v3931_v57  ;;  %2671 = vmax.xlane.f32.xlu1 %v2609_v14 }
 0x4ee   : > { %v3935_v15 = vpop.f32.mrf.mxu1 }
 0x4f0   : > { %v2622_v16 = vpop.f32.mrf.mxu1 }
 0x4f1   : > { %2675 = vmax.xlane.f32.xlu1 %v3932_v5  ;;  %2677 = vmax.xlane.f32.xlu0 %v2622_v16 }
 0x4f2   : > { %v3936_v17 = vpop.f32.mrf.mxu1 }
 0x4f4   : > { %v2625_v19 = vpop.f32.mrf.mxu1 }
 0x4f5   : > { %2681 = vmax.xlane.f32.xlu0 %v3935_v15  ;;  %2679 = vmax.xlane.f32.xlu1 %v2625_v19 }
 0x4f6   : > { %v3939_v51 = vpop.f32.mrf.mxu1 }
 0x4f8   : > { %v2638_v4 = vpop.f32.mrf.mxu1 }
 0x4f9   : > { %2683 = vmax.xlane.f32.xlu1 %v3936_v17  ;;  %2685 = vmax.xlane.f32.xlu0 %v2638_v4 }
 0x4fa   : > { %v5000_v7 = vpop.f32.mrf.mxu1 }
 0x4fc   : > { %v2641_v8 = vpop.f32.mrf.mxu1 }
 0x4fd   : > { %2689 = vmax.xlane.f32.xlu0 %v3939_v51  ;;  %2687 = vmax.xlane.f32.xlu1 %v2641_v8 }
 0x4fe   : > { %v5002_v10 = vpop.f32.mrf.mxu1 }
 0x500   : > { %v5004_v18 = vpop.f32.mrf.mxu1 }
 0x501   : > { %2691 = vmax.xlane.f32.xlu1 %v5000_v7  ;;  %2693 = vmax.xlane.f32.xlu0 %v5004_v18 }
 0x502   : > { %v5008_v20 = vpop.f32.mrf.mxu1 }
 0x504   : > { %v5010_v6 = vpop.f32.mrf.mxu1 }
 0x505   : > { %2697 = vmax.xlane.f32.xlu0 %v5002_v10  ;;  %2695 = vmax.xlane.f32.xlu1 %v5010_v6 }
 0x509   : > { %2699 = vmax.xlane.f32.xlu1 %v5008_v20 }
 0x572   : > { %v2670_v11 = vpop.xlane.xlu0 %2669 }
 0x573   : > { %v2701_v22 = vsub.f32 %v2606_v13, %v2670_v11 }
 0x575   : > { %v2717_v21 = vmul.f32 1.442695, %v2701_v22  ;;  %v4287_v22 = vld [vmem:[#allocation9 + $0xf4] ss:$8 sps:$4 sm:$0xff]  }
 0x576   : > { %v2674_v9 = vpop.xlane.xlu0 %2673  ;;  %v2672_v28 = vpop.xlane.xlu1 %2671  ;;  %3102 = vmatprep.subr.bf16.mxu0 %v4287_v22  ;;  %3977 = vmatprep.subr.bf16.mxu1 %v4287_v22 }
 0x577   : > { %4373 = vpow2.f32 %v2717_v21  ;;  %v2703_v29 = vsub.f32 %v3931_v57, %v2674_v9  ;;  %v2702_v30 = vsub.f32 %v2609_v14, %v2672_v28  ;;  %v5068_v21 = vld [vmem:[#allocation9 + $0xf0] ss:$8 sps:$4 sm:$0xff]   ;;  %v5070_v9 = vld [vmem:[#allocation9 + $0xe4] ss:$8 sps:$4 sm:$0xff]   ;;  %v5074_v28 = vld [vmem:[#allocation9 + $0xe0] ss:$8 sps:$4 sm:$0xff]  }
 0x578   : > { %3985 = vmatpush1.bf16.msra.mxu1 %v5068_v21 }
 0x579   : > { %v2721_v23 = vmul.f32 1.442695, %v2703_v29  ;;  %v2719_v26 = vmul.f32 1.442695, %v2702_v30  ;;  %3978 = vmatprep.subr.bf16.mxu1 %v5070_v9  ;;  %v5076_v29 = vld [vmem:[#allocation9 + $0xd4] ss:$8 sps:$4 sm:$0xff]  }
 0x57a   : > { %v2676_v24 = vpop.xlane.xlu1 %2675  ;;  %v2678_v27 = vpop.xlane.xlu0 %2677  ;;  %v5080_v30 = vld [vmem:[#allocation9 + $0xd0] ss:$8 sps:$4 sm:$0xff]  }
 0x57b   : > { %4375 = vpow2.f32 %v2721_v23  ;;  %v2704_v31 = vsub.f32 %v3932_v5, %v2676_v24  ;;  %v2705_v32 = vsub.f32 %v2622_v16, %v2678_v27  ;;  %v5082_v23 = vld [vmem:[#allocation9 + $0xc4] ss:$8 sps:$4 sm:$0xff]   ;;  %v5088_v24 = vld [vmem:[#allocation9 + $0xb4] ss:$8 sps:$4 sm:$0xff]   ;;  %v5092_v27 = vld [vmem:[#allocation9 + $0xb0] ss:$8 sps:$4 sm:$0xff]  }
 0x57c   : > { %4377 = vpow2.f32 %v2719_v26  ;;  %3986 = vmatpush1.bf16.msra.mxu1 %v5074_v28  ;;  %v5086_v26 = vld [vmem:[#allocation9 + $0xc0] ss:$8 sps:$4 sm:$0xff]  }
 0x57d   : > { %v2723_v34 = vmul.f32 1.442695, %v2704_v31  ;;  %v2725_v35 = vmul.f32 1.442695, %v2705_v32  ;;  %3979 = vmatprep.subr.bf16.mxu1 %v5076_v29  ;;  %v5094_v31 = vld [vmem:[#allocation9 + $0xa4] ss:$8 sps:$4 sm:$0xff]  }
 0x57e   : > { %v2682_v36 = vpop.xlane.xlu0 %2681  ;;  %v2680_v37 = vpop.xlane.xlu1 %2679  ;;  %v5098_v32 = vld [vmem:[#allocation9 + $0xa0] ss:$8 sps:$4 sm:$0xff]  }
 0x57f   : > { %4379 = vpow2.f32 %v2723_v34  ;;  %v2707_v38 = vsub.f32 %v3935_v15, %v2682_v36  ;;  %v2706_v39 = vsub.f32 %v2625_v19, %v2680_v37 }
 0x580   : > { %4381 = vpow2.f32 %v2725_v35  ;;  %3987 = vmatpush1.bf16.msra.mxu1 %v5080_v30 }
 0x581   : > { %v2729_v40 = vmul.f32 1.442695, %v2707_v38  ;;  %v2727_v41 = vmul.f32 1.442695, %v2706_v39  ;;  %3980 = vmatprep.subr.bf16.mxu1 %v5082_v23 }
 0x582   : > { %v2684_v42 = vpop.xlane.xlu1 %2683  ;;  %v2686_v43 = vpop.xlane.xlu0 %2685 }
 0x583   : > { %4383 = vpow2.f32 %v2729_v40  ;;  %v2708_v44 = vsub.f32 %v3936_v17, %v2684_v42  ;;  %v2709_v45 = vsub.f32 %v2638_v4, %v2686_v43 }
 0x584   : > { %v5015_v46 = vpop.eup %4373  ;;  %4385 = vpow2.f32 %v2727_v41  ;;  %3988 = vmatpush1.bf16.msra.mxu1 %v5086_v26 }
 0x585   : > { %v2731_v47 = vmul.f32 1.442695, %v2708_v44  ;;  %v2733_v48 = vmul.f32 1.442695, %v2709_v45  ;;  %2749 = vadd.xlane.f32.xlu0 %v5015_v46  ;;  %3981 = vmatprep.subr.bf16.mxu1 %v5088_v24 }
 0x586   : > { %v2690_v49 = vpop.xlane.xlu0 %2689  ;;  %v2688_v50 = vpop.xlane.xlu1 %2687 }
 0x587   : > { %4387 = vpow2.f32 %v2731_v47  ;;  %v2711_v53 = vsub.f32 %v3939_v51, %v2690_v49  ;;  %v2710_v25 = vsub.f32 %v2641_v8, %v2688_v50 }
 0x588   : > { %v5018_v52 = vpop.eup %4375  ;;  %4389 = vpow2.f32 %v2733_v48  ;;  %3989 = vmatpush1.bf16.msra.mxu1 %v5092_v27 }
 0x589   : > { %v5020_v54 = vpop.eup %4377  ;;  %v2737_v55 = vmul.f32 1.442695, %v2711_v53  ;;  %v2735_v56 = vmul.f32 1.442695, %v2710_v25  ;;  %2753 = vadd.xlane.f32.xlu0 %v5018_v52  ;;  %3982 = vmatprep.subr.bf16.mxu1 %v5094_v31 }
 0x58a   : > { %2751 = vadd.xlane.f32.xlu1 %v5020_v54  ;;  %v2692_v59 = vpop.xlane.xlu1 %2691  ;;  %v2694_v58 = vpop.xlane.xlu0 %2693 }
 0x58b   : > { %4391 = vpow2.f32 %v2737_v55  ;;  %v2712_v60 = vsub.f32 %v5000_v7, %v2692_v59  ;;  %v2713_v61 = vsub.f32 %v5004_v18, %v2694_v58 }
 0x58c   : > { %v5026_v62 = vpop.eup %4379  ;;  %4393 = vpow2.f32 %v2735_v56  ;;  %3990 = vmatpush1.bf16.msra.mxu1 %v5098_v32 }
 0x58d   : > { %v5028_v63 = vpop.eup %4381  ;;  %v2739_v0 = vmul.f32 1.442695, %v2712_v60  ;;  %v2741_v1 = vmul.f32 1.442695, %v2713_v61 }
 0x58e   : > { %2757 = vadd.xlane.f32.xlu0 %v5028_v63  ;;  %2755 = vadd.xlane.f32.xlu1 %v5026_v62  ;;  %v2698_v3 = vpop.xlane.xlu0 %2697  ;;  %v2696_v12 = vpop.xlane.xlu1 %2695 }
 0x58f   : > { %4395 = vpow2.f32 %v2739_v0  ;;  %v2715_v2 = vsub.f32 %v5002_v10, %v2698_v3  ;;  %v2714_v57 = vsub.f32 %v5010_v6, %v2696_v12 }
 0x590   : > { %v5034_v13 = vpop.eup %4383  ;;  %4397 = vpow2.f32 %v2741_v1 }
 0x591   : > { %v5036_v5 = vpop.eup %4385  ;;  %v2745_v14 = vmul.f32 1.442695, %v2715_v2  ;;  %v2743_v15 = vmul.f32 1.442695, %v2714_v57 }
 0x592   : > { %2761 = vadd.xlane.f32.xlu0 %v5034_v13  ;;  %2759 = vadd.xlane.f32.xlu1 %v5036_v5  ;;  %v2700_v16 = vpop.xlane.xlu1 %2699 }
 0x593   : > { %4399 = vpow2.f32 %v2745_v14  ;;  %v2716_v17 = vsub.f32 %v5008_v20, %v2700_v16 }
 0x594   : > { %v5041_v19 = vpop.eup %4387  ;;  %4401 = vpow2.f32 %v2743_v15 }
 0x595   : > { %v5043_v51 = vpop.eup %4389  ;;  %v2747_v4 = vmul.f32 1.442695, %v2716_v17 }
 0x596   : > { %2765 = vadd.xlane.f32.xlu0 %v5043_v51  ;;  %2763 = vadd.xlane.f32.xlu1 %v5041_v19 }
 0x597   : > { %4403 = vpow2.f32 %v2747_v4 }
 0x598   : > { %v5047_v7 = vpop.eup %4391 }
 0x599   : > { %v5049_v8 = vpop.eup %4393 }
 0x59a   : > { %2769 = vadd.xlane.f32.xlu0 %v5047_v7  ;;  %2767 = vadd.xlane.f32.xlu1 %v5049_v8 }
 0x59c   : > { %v5053_v10 = vpop.eup %4395 }
 0x59d   : > { %v5055_v18 = vpop.eup %4397 }
 0x59e   : > { %2773 = vadd.xlane.f32.xlu0 %v5055_v18  ;;  %2771 = vadd.xlane.f32.xlu1 %v5053_v10 }
 0x5a0   : > { %v5059_v20 = vpop.eup %4399 }
 0x5a1   : > { %v5061_v6 = vpop.eup %4401 }
 0x5a2   : > { %2777 = vadd.xlane.f32.xlu0 %v5059_v20  ;;  %2775 = vadd.xlane.f32.xlu1 %v5061_v6 }
 0x5a4   : > { %v5065_v11 = vpop.eup %4403 }
 0x5a6   : > { %2779 = vadd.xlane.f32.xlu1 %v5065_v11 }
 0x60e   : > { %v2750_v34 = vpop.xlane.xlu0 %2749 }
 0x60f   : > { %4405 = vrcp.f32 %v2750_v34 }
 0x612   : > { %v2754_v35 = vpop.xlane.xlu0 %2753 }
 0x613   : > { %v2752_v36 = vpop.xlane.xlu1 %2751 }
 0x614   : > { %4407 = vrcp.f32 %v2752_v36 }
 0x615   : > { %4409 = vrcp.f32 %v2754_v35 }
 0x617   : > { %v2758_v37 = vpop.xlane.xlu0 %2757  ;;  %v2756_v38 = vpop.xlane.xlu1 %2755 }
 0x618   : > { %4411 = vrcp.f32 %v2756_v38 }
 0x619   : > { %4413 = vrcp.f32 %v2758_v37 }
 0x61b   : > { %v2762_v39 = vpop.xlane.xlu0 %2761  ;;  %v2760_v40 = vpop.xlane.xlu1 %2759 }
 0x61c   : > { %4415 = vrcp.f32 %v2760_v40  ;;  %v4406_v41 = vpop.eup %4405 }
 0x61d   : > { %4417 = vrcp.f32 %v2762_v39  ;;  %v2797_v45 = vmul.f32 %v4406_v41, %v5015_v46 }
 0x61f   : > { %v2766_v42 = vpop.xlane.xlu0 %2765  ;;  %v2764_v43 = vpop.xlane.xlu1 %2763 }
 0x620   : > { %4419 = vrcp.f32 %v2764_v43 }
 0x621   : > { %v4408_v44 = vpop.eup %4407  ;;  %4421 = vrcp.f32 %v2766_v42 }
 0x622   : > { %v2798_v47 = vmul.f32 %v4408_v44, %v5020_v54  ;;  %v4410_v50 = vpop.eup %4409 }
 0x623   : > { %v2770_v48 = vpop.xlane.xlu0 %2769  ;;  %v2768_v49 = vpop.xlane.xlu1 %2767  ;;  %v2799_v59 = vmul.f32 %v4410_v50, %v5018_v52 }
 0x624   : > { %v2813_v53 = vpack.c.bf16 %v2798_v47, %v2797_v45  ;;  %4423 = vrcp.f32 %v2768_v49 }
 0x625   : > { %v4412_v25 = vpop.eup %4411  ;;  %4425 = vrcp.f32 %v2770_v48 }
 0x626   : > { %3961 = vmatprep.mubr.bf16.mxu0 %v2813_v53  ;;  %v2800_v58 = vmul.f32 %v4412_v25, %v5026_v62  ;;  %v4414_v60 = vpop.eup %4413 }
 0x627   : > { %v2774_v55 = vpop.xlane.xlu0 %2773  ;;  %v2772_v56 = vpop.xlane.xlu1 %2771  ;;  %v2801_v1 = vmul.f32 %v4414_v60, %v5028_v63 }
 0x628   : > { %4427 = vrcp.f32 %v2772_v56  ;;  %v2814_v46 = vpack.c.bf16 %v2800_v58, %v2799_v59 }
 0x629   : > { %v4416_v61 = vpop.eup %4415  ;;  %4429 = vrcp.f32 %v2774_v55 }
 0x62a   : > { %3962 = vmatmul.mubr.bf16.vlgmr.msra.gmra.mxu0 %v2814_v46  ;;  %v2802_v3 = vmul.f32 %v4416_v61, %v5036_v5  ;;  %v4418_v12 = vpop.eup %4417 }
 0x62b   : > { %v2778_v54 = vpop.xlane.xlu0 %2777  ;;  %v2776_v0 = vpop.xlane.xlu1 %2775  ;;  %3103 = vmatpush1.bf16.msra.mxu0 %v5068_v21  ;;  %v2803_v57 = vmul.f32 %v4418_v12, %v5034_v13 }
 0x62c   : > { %4431 = vrcp.f32 %v2776_v0  ;;  %v2815_v2 = vpack.c.bf16 %v2802_v3, %v2801_v1  ;;  %3104 = vmatprep.subr.bf16.mxu0 %v5070_v9 }
 0x62d   : > { %v4420_v52 = vpop.eup %4419  ;;  %4433 = vrcp.f32 %v2778_v54 }
 0x62e   : > { %3965 = vmatprep.mubr.bf16.mxu0 %v2815_v2  ;;  %v2804_v14 = vmul.f32 %v4420_v52, %v5041_v19  ;;  %v4422_v15 = vpop.eup %4421 }
 0x62f   : > { %v2780_v62 = vpop.xlane.xlu1 %2779  ;;  %3105 = vmatpush1.bf16.msra.mxu0 %v5074_v28  ;;  %v2805_v16 = vmul.f32 %v4422_v15, %v5043_v51 }
 0x630   : > { %4435 = vrcp.f32 %v2780_v62  ;;  %v2816_v63 = vpack.c.bf16 %v2804_v14, %v2803_v57  ;;  %3106 = vmatprep.subr.bf16.mxu0 %v5076_v29 }
 0x631   : > { %v4424_v5 = vpop.eup %4423 }
 0x632   : > { %3966 = vmatmul.mubr.bf16.gmra.mxu0 %v2816_v63  ;;  %v2806_v17 = vmul.f32 %v4424_v5, %v5049_v8  ;;  %v4426_v4 = vpop.eup %4425 }
 0x633   : > { %3107 = vmatpush1.bf16.msra.mxu0 %v5080_v30  ;;  %v2807_v19 = vmul.f32 %v4426_v4, %v5047_v7 }
 0x634   : > { %v2817_v22 = vpack.c.bf16 %v2806_v17, %v2805_v16  ;;  %3108 = vmatprep.subr.bf16.mxu0 %v5082_v23 }
 0x635   : > { %v4428_v13 = vpop.eup %4427 }
 0x636   : > { %3969 = vmatprep.mubr.bf16.mxu0 %v2817_v22  ;;  %v2808_v21 = vmul.f32 %v4428_v13, %v5053_v10  ;;  %v4430_v9 = vpop.eup %4429 }
 0x637   : > { %3109 = vmatpush1.bf16.msra.mxu0 %v5086_v26  ;;  %v2809_v29 = vmul.f32 %v4430_v9, %v5055_v18  ;;  %v4305_v18 = vld [vmem:[#allocation9 + $0x94] ss:$8 sps:$4 sm:$0xff]  }
 0x638   : > { %v2818_v28 = vpack.c.bf16 %v2808_v21, %v2807_v19  ;;  %3110 = vmatprep.subr.bf16.mxu0 %v5088_v24  ;;  %v4303_v24 = vld [vmem:[#allocation9 + $0x90] ss:$8 sps:$4 sm:$0xff]   ;;  %3983 = vmatprep.subr.bf16.mxu1 %v4305_v18 }
 0x639   : > { %v4432_v51 = vpop.eup %4431  ;;  %3991 = vmatpush1.bf16.msra.mxu1 %v4303_v24 }
 0x63a   : > { %v4434_v8 = vpop.eup %4433  ;;  %3970 = vmatmul.mubr.bf16.gmra.mxu0 %v2818_v28  ;;  %v2810_v30 = vmul.f32 %v4432_v51, %v5061_v6  ;;  %v5129_v6 = vpop.f32.mrf.mxu0 }
 0x63b   : > { %3111 = vmatpush1.bf16.msra.mxu0 %v5092_v27  ;;  %v2811_v7 = vmul.f32 %v4434_v8, %v5059_v20  ;;  %v4308_v27 = vld [vmem:[#allocation9 + $0x84] ss:$8 sps:$4 sm:$0xff]  }
 0x63c   : > { %v2819_v34 = vpack.c.bf16 %v2810_v30, %v2809_v29  ;;  %3112 = vmatprep.subr.bf16.mxu0 %v5094_v31  ;;  %v4306_v31 = vld [vmem:[#allocation9 + $0x80] ss:$8 sps:$4 sm:$0xff]   ;;  %3984 = vmatprep.subr.bf16.mxu1 %v4308_v27  ;;  %v5131_v20 = vpop.f32.mrf.mxu0 }
 0x63d   : > { %v4436_v23 = vpop.eup %4435  ;;  %3992 = vmatpush1.bf16.msra.mxu1 %v4306_v31 }
 0x63e   : > { %v2812_v10 = vmul.f32 %v4436_v23, %v5065_v11  ;;  %3973 = vmatprep.mubr.bf16.mxu0 %v2819_v34  ;;  %v5133_v11 = vpop.f32.mrf.mxu0 }
 0x63f   : > { %3113 = vmatpush1.bf16.msra.mxu0 %v5098_v32 }
 0x640   : > { %v2820_v26 = vpack.c.bf16 %v2812_v10, %v2811_v7  ;;  %3114 = vmatprep.subr.bf16.mxu0 %v4305_v18  ;;  %v5135_v32 = vpop.f32.mrf.mxu0  ;;  %v3313_v7 = vlaneseq  ;;  %v3311_v18 = vld [vmem:[%s5359_s3] sm:$0x3] }
 0x642   : > { %3974 = vmatmul.mubr.bf16.gmra.mxu0 %v2820_v26  ;;  %v5137_v35 = vpop.f32.mrf.mxu0  ;;  %v3314_v10 = vshrl.u32 %v3313_v7, 7 }
 0x643   : > { %3134 = vmatprep.mubr.bf16.mxu0 %v4596_v33  ;;  %3115 = vmatpush1.bf16.msra.mxu0 %v4303_v24 }
 0x644   : > { %3116 = vmatprep.subr.bf16.mxu0 %v4308_v27  ;;  %v5139_v36 = vpop.f32.mrf.mxu0  ;;  %v3315_v26 = vsub.s32 0, %v3314_v10  ;;  %v3319_v24 = vsub.s32 1, %v3314_v10 }
 0x646   : > { %v5141_v37 = vpop.f32.mrf.mxu0  ;;  %v5202_v27 = vrot.slane %v3311_v18, %v3315_v26 }
 0x647   : > { %3117 = vmatpush1.bf16.msra.mxu0 %v4306_v31 }
 0x648   : > { %v5143_v38 = vpop.f32.mrf.mxu0 }
 0x64a   : > { %v5145_v39 = vpop.f32.mrf.mxu0 }
 0x64c   : > { %v5147_v40 = vpop.f32.mrf.mxu0 }
 0x64e   : > { %v5149_v41 = vpop.f32.mrf.mxu0 }
 0x650   : > { %v5151_v42 = vpop.f32.mrf.mxu0 }
 0x652   : > { %v5153_v43 = vpop.f32.mrf.mxu0 }
 0x654   : > { %v5155_v44 = vpop.f32.mrf.mxu0 }
 0x656   : > { %v5157_v45 = vpop.f32.mrf.mxu0 }
 0x658   : > { %v5159_v47 = vpop.f32.mrf.mxu0 }
 0x65a   : > { %v5161_v48 = vpop.f32.mrf.mxu0 }
 0x65c   : > { %v5163_v49 = vpop.f32.mrf.mxu0 }
 0x65e   : > { %v5165_v50 = vpop.f32.mrf.mxu0 }
 0x660   : > { %v5167_v53 = vpop.f32.mrf.mxu0 }
 0x662   : > { %v5169_v25 = vpop.f32.mrf.mxu0 }
 0x664   : > { %v5171_v55 = vpop.f32.mrf.mxu0 }
 0x666   : > { %v5173_v56 = vpop.f32.mrf.mxu0 }
 0x668   : > { %v5175_v59 = vpop.f32.mrf.mxu0 }
 0x66a   : > { %v5177_v58 = vpop.f32.mrf.mxu0 }
 0x66c   : > { %v5179_v60 = vpop.f32.mrf.mxu0 }
 0x66e   : > { %v5181_v46 = vpop.f32.mrf.mxu0 }
 0x670   : > { %v5183_v61 = vpop.f32.mrf.mxu0 }
 0x672   : > { %v5185_v54 = vpop.f32.mrf.mxu0 }
 0x674   : > { %v5187_v0 = vpop.f32.mrf.mxu0 }
 0x676   : > { %v5189_v1 = vpop.f32.mrf.mxu0 }
 0x678   : > { %v5191_v3 = vpop.f32.mrf.mxu0 }
 0x6ea   : > { %v3963_v12 = vpop.f32.mrf.mxu0 }
 0x6ec   : > { %v2903_v2 = vpop.f32.mrf.mxu0 }
 0x6ee   : > { %v3964_v52 = vpop.f32.mrf.mxu0 }
 0x6ef   : > { %v2999_v16 = vpack.c.bf16 %v3964_v52, %v3963_v12 }
 0x6f0   : > { %v2906_v62 = vpop.f32.mrf.mxu0 }
 0x6f1   : > { %v2998_v57 = vpack.c.bf16 %v2906_v62, %v2903_v2  ;;  %v5205_v2 = vrot.slane %v3311_v18, %v3319_v24 }
 0x6f2   : > { %v3967_v14 = vpop.f32.mrf.mxu0 }
 0x6f3   : > { %3135 = vmatmul.mubr.bf16.vlgmr.msra.gmra.mxu0 %v2998_v57 }
 0x6f4   : > { %v2919_v15 = vpop.f32.mrf.mxu0  ;;  %3144 = vmatprep.mubr.bf16.mxu0 %v4596_v33 }
 0x6f6   : > { %v3968_v63 = vpop.f32.mrf.mxu0 }
 0x6f7   : > { %v3001_v13 = vpack.c.bf16 %v3968_v63, %v3967_v14 }
 0x6f8   : > { %v2922_v5 = vpop.f32.mrf.mxu0 }
 0x6f9   : > { %v3000_v17 = vpack.c.bf16 %v2922_v5, %v2919_v15 }
 0x6fa   : > { %v3971_v4 = vpop.f32.mrf.mxu0 }
 0x6fb   : > { %3145 = vmatmul.mubr.bf16.gmra.mxu0 %v2999_v16  ;;  %3155 = vmatmul.mubr.bf16.vlgmr.msra.gmra.mxu1 %v3000_v17 }
 0x6fc   : > { %3164 = vmatprep.mubr.bf16.mxu1 %v4596_v33  ;;  %v2935_v22 = vpop.f32.mrf.mxu0 }
 0x6fe   : > { %v3972_v19 = vpop.f32.mrf.mxu0 }
 0x6ff   : > { %v3003_v8 = vpack.c.bf16 %v3972_v19, %v3971_v4 }
 0x700   : > { %v2938_v21 = vpop.f32.mrf.mxu0 }
 0x701   : > { %v3002_v9 = vpack.c.bf16 %v2938_v21, %v2935_v22 }
 0x702   : > { %v3975_v28 = vpop.f32.mrf.mxu0 }
 0x703   : > { %3165 = vmatmul.mubr.bf16.gmra.mxu1 %v3001_v13 }
 0x704   : > { %3174 = vmatprep.mubr.bf16.mxu1 %v4596_v33  ;;  %v2951_v51 = vpop.f32.mrf.mxu0 }
 0x706   : > { %v3976_v29 = vpop.f32.mrf.mxu0 }
 0x707   : > { %v3005_v34 = vpack.c.bf16 %v3976_v29, %v3975_v28 }
 0x708   : > { %v2954_v30 = vpop.f32.mrf.mxu0 }
 0x709   : > { %v3004_v23 = vpack.c.bf16 %v2954_v30, %v2951_v51 }
 0x70b   : > { %3175 = vmatmul.mubr.bf16.gmra.mxu1 %v3002_v9 }
 0x70c   : > { %3184 = vmatprep.mubr.bf16.mxu1 %v4596_v33 }
 0x713   : > { %3185 = vmatmul.mubr.bf16.gmra.mxu1 %v3003_v8 }
 0x714   : > { %3194 = vmatprep.mubr.bf16.mxu1 %v4596_v33 }
 0x71b   : > { %3195 = vmatmul.mubr.bf16.gmra.mxu1 %v3004_v23 }
 0x71c   : > { %3204 = vmatprep.mubr.bf16.mxu1 %v4596_v33 }
 0x723   : > { %3205 = vmatmul.mubr.bf16.gmra.mxu1 %v3005_v34 }
 0x7b3   : > { %v3136_v31 = vpop.f32.mrf.mxu0 }
 0x7b4   : > { %v3215_v12 = vadd.f32 %v3136_v31, %v5129_v6 }
 0x7b5   : > { %v3138_v52 = vpop.f32.mrf.mxu0 }
 0x7b6   : > { %v3323_v33 = vadd.f32 %v5202_v27, %v3215_v12  ;;  %v3216_v62 = vadd.f32 %v3138_v52, %v5131_v20 }
 0x7b7   : > { %v3140_v57 = vpop.f32.mrf.mxu0 }
 0x7b8   : > { %3355 = vst [vmem:[%s5211_s5] sm:$0xff] %v3323_v33  ;;  %v3324_v14 = vadd.f32 %v5205_v2, %v3216_v62  ;;  %v3217_v6 = vadd.f32 %v3140_v57, %v5133_v11 }
 0x7b9   : > { %v3142_v15 = vpop.f32.mrf.mxu0 }
 0x7ba   : > { %3356 = vst [vmem:[%s5211_s5 + $0x8] sm:$0xff] %v3324_v14  ;;  %v3325_v63 = vadd.f32 %v5202_v27, %v3217_v6  ;;  %v3218_v5 = vadd.f32 %v3142_v15, %v5135_v32 }
 0x7bb   : > { %v3146_v20 = vpop.f32.mrf.mxu0  ;;  %v3156_v16 = vpop.f32.mrf.mxu1 }
 0x7bc   : > { %3357 = vst [vmem:[%s5211_s5 + $0x10] sm:$0xff] %v3325_v63  ;;  %v3326_v17 = vadd.f32 %v5205_v2, %v3218_v5  ;;  %v3219_v4 = vadd.f32 %v3146_v20, %v5137_v35  ;;  %v3223_v22 = vadd.f32 %v3156_v16, %v5145_v39 }
 0x7bd   : > { %v3148_v13 = vpop.f32.mrf.mxu0  ;;  %v3158_v19 = vpop.f32.mrf.mxu1 }
 0x7be   : > { %3358 = vst [vmem:[%s5211_s5 + $0x18] sm:$0xff] %v3326_v17  ;;  %v3327_v11 = vadd.f32 %v5202_v27, %v3219_v4  ;;  %v3331_v32 = vadd.f32 %v5202_v27, %v3223_v22  ;;  %v3220_v21 = vadd.f32 %v3148_v13, %v5139_v36  ;;  %v3224_v9 = vadd.f32 %v3158_v19, %v5147_v40 }
 0x7bf   : > { %v3150_v28 = vpop.f32.mrf.mxu0  ;;  %v3160_v51 = vpop.f32.mrf.mxu1 }
 0x7c0   : > { %3359 = vst [vmem:[%s5211_s5 + $0x20] sm:$0xff] %v3327_v11  ;;  %3363 = vst [vmem:[%s5211_s5 + $0x40] sm:$0xff] %v3331_v32  ;;  %v3328_v35 = vadd.f32 %v5205_v2, %v3220_v21  ;;  %v3332_v39 = vadd.f32 %v5205_v2, %v3224_v9  ;;  %v3221_v8 = vadd.f32 %v3150_v28, %v5141_v37 }
 0x7c1   : > { %v3225_v29 = vadd.f32 %v3160_v51, %v5149_v41  ;;  %v3152_v30 = vpop.f32.mrf.mxu0  ;;  %v3162_v36 = vpop.f32.mrf.mxu1 }
 0x7c2   : > { %3360 = vst [vmem:[%s5211_s5 + $0x28] sm:$0xff] %v3328_v35  ;;  %3364 = vst [vmem:[%s5211_s5 + $0x48] sm:$0xff] %v3332_v39  ;;  %v3329_v40 = vadd.f32 %v5202_v27, %v3221_v8  ;;  %v3222_v34 = vadd.f32 %v3152_v30, %v5143_v38  ;;  %v3226_v7 = vadd.f32 %v3162_v36, %v5151_v42 }
 0x7c3   : > { %v3333_v23 = vadd.f32 %v5202_v27, %v3225_v29  ;;  %v3166_v10 = vpop.f32.mrf.mxu1 }
 0x7c4   : > { %3361 = vst [vmem:[%s5211_s5 + $0x30] sm:$0xff] %v3329_v40  ;;  %v3330_v37 = vadd.f32 %v5205_v2, %v3222_v34  ;;  %v3334_v41 = vadd.f32 %v5205_v2, %v3226_v7  ;;  %v3227_v26 = vadd.f32 %v3166_v10, %v5153_v43 }
 0x7c5   : > { %3365 = vst [vmem:[%s5211_s5 + $0x50] sm:$0xff] %v3333_v23  ;;  %v3168_v18 = vpop.f32.mrf.mxu1 }
 0x7c6   : > { %3362 = vst [vmem:[%s5211_s5 + $0x38] sm:$0xff] %v3330_v37  ;;  %3366 = vst [vmem:[%s5211_s5 + $0x58] sm:$0xff] %v3334_v41  ;;  %v3335_v24 = vadd.f32 %v5202_v27, %v3227_v26  ;;  %v3228_v38 = vadd.f32 %v3168_v18, %v5155_v44 }
 0x7c7   : > { %v3170_v42 = vpop.f32.mrf.mxu1 }
 0x7c8   : > { %3367 = vst [vmem:[%s5211_s5 + $0x60] sm:$0xff] %v3335_v24  ;;  %v3336_v31 = vadd.f32 %v5205_v2, %v3228_v38  ;;  %v3229_v12 = vadd.f32 %v3170_v42, %v5157_v45 }
 0x7c9   : > { %v3172_v52 = vpop.f32.mrf.mxu1 }
 0x7ca   : > { %3368 = vst [vmem:[%s5211_s5 + $0x68] sm:$0xff] %v3336_v31  ;;  %v3337_v43 = vadd.f32 %v5202_v27, %v3229_v12  ;;  %v3230_v33 = vadd.f32 %v3172_v52, %v5159_v47 }
 0x7cb   : > { %v3176_v62 = vpop.f32.mrf.mxu1 }
 0x7cc   : > { %3369 = vst [vmem:[%s5211_s5 + $0x70] sm:$0xff] %v3337_v43  ;;  %v3338_v57 = vadd.f32 %v5205_v2, %v3230_v33  ;;  %v3231_v44 = vadd.f32 %v3176_v62, %v5161_v48 }
 0x7cd   : > { %v3178_v14 = vpop.f32.mrf.mxu1 }
 0x7ce   : > { %3370 = vst [vmem:[%s5211_s5 + $0x78] sm:$0xff] %v3338_v57  ;;  %v3339_v6 = vadd.f32 %v5202_v27, %v3231_v44  ;;  %v3232_v45 = vadd.f32 %v3178_v14, %v5163_v49 }
 0x7cf   : > { %v3180_v15 = vpop.f32.mrf.mxu1 }
 0x7d0   : > { %3371 = vst [vmem:[%s5211_s5 + $0x80] sm:$0xff] %v3339_v6  ;;  %v3340_v63 = vadd.f32 %v5205_v2, %v3232_v45  ;;  %v3233_v47 = vadd.f32 %v3180_v15, %v5165_v50 }
 0x7d1   : > { %v3182_v5 = vpop.f32.mrf.mxu1 }
 0x7d2   : > { %3372 = vst [vmem:[%s5211_s5 + $0x88] sm:$0xff] %v3340_v63  ;;  %v3341_v20 = vadd.f32 %v5202_v27, %v3233_v47  ;;  %v3234_v48 = vadd.f32 %v3182_v5, %v5167_v53 }
 0x7d3   : > { %v3186_v16 = vpop.f32.mrf.mxu1 }
 0x7d4   : > { %3373 = vst [vmem:[%s5211_s5 + $0x90] sm:$0xff] %v3341_v20  ;;  %v3342_v17 = vadd.f32 %v5205_v2, %v3234_v48  ;;  %v3235_v49 = vadd.f32 %v3186_v16, %v5169_v25 }
 0x7d5   : > { %v3188_v4 = vpop.f32.mrf.mxu1 }
 0x7d6   : > { %3374 = vst [vmem:[%s5211_s5 + $0x98] sm:$0xff] %v3342_v17  ;;  %v3343_v22 = vadd.f32 %v5202_v27, %v3235_v49  ;;  %v3236_v50 = vadd.f32 %v3188_v4, %v5171_v55 }
 0x7d7   : > { %v3190_v13 = vpop.f32.mrf.mxu1 }
 0x7d8   : > { %3375 = vst [vmem:[%s5211_s5 + $0xa0] sm:$0xff] %v3343_v22  ;;  %v3344_v19 = vadd.f32 %v5205_v2, %v3236_v50  ;;  %v3237_v53 = vadd.f32 %v3190_v13, %v5173_v56 }
 0x7d9   : > { %v3192_v11 = vpop.f32.mrf.mxu1 }
 0x7da   : > { %3376 = vst [vmem:[%s5211_s5 + $0xa8] sm:$0xff] %v3344_v19  ;;  %v3345_v32 = vadd.f32 %v5202_v27, %v3237_v53  ;;  %v3238_v25 = vadd.f32 %v3192_v11, %v5175_v59 }
 0x7db   : > { %v3196_v21 = vpop.f32.mrf.mxu1 }
 0x7dc   : > { %3377 = vst [vmem:[%s5211_s5 + $0xb0] sm:$0xff] %v3345_v32  ;;  %v3346_v9 = vadd.f32 %v5205_v2, %v3238_v25  ;;  %v3239_v55 = vadd.f32 %v3196_v21, %v5177_v58 }
 0x7dd   : > { %v3198_v28 = vpop.f32.mrf.mxu1 }
 0x7de   : > { %3378 = vst [vmem:[%s5211_s5 + $0xb8] sm:$0xff] %v3346_v9  ;;  %v3347_v51 = vadd.f32 %v5202_v27, %v3239_v55  ;;  %v3240_v56 = vadd.f32 %v3198_v28, %v5179_v60 }
 0x7df   : > { %v3200_v35 = vpop.f32.mrf.mxu1 }
 0x7e0   : > { %3379 = vst [vmem:[%s5211_s5 + $0xc0] sm:$0xff] %v3347_v51  ;;  %v3348_v39 = vadd.f32 %v5205_v2, %v3240_v56  ;;  %v3241_v59 = vadd.f32 %v3200_v35, %v5181_v46 }
 0x7e1   : > { %v3202_v8 = vpop.f32.mrf.mxu1 }
 0x7e2   : > { %3380 = vst [vmem:[%s5211_s5 + $0xc8] sm:$0xff] %v3348_v39  ;;  %v3349_v58 = vadd.f32 %v5202_v27, %v3241_v59  ;;  %v3242_v29 = vadd.f32 %v3202_v8, %v5183_v61 }
 0x7e3   : > { %v3206_v30 = vpop.f32.mrf.mxu1 }
 0x7e4   : > { %3381 = vst [vmem:[%s5211_s5 + $0xd0] sm:$0xff] %v3349_v58  ;;  %v3350_v60 = vadd.f32 %v5205_v2, %v3242_v29  ;;  %v3243_v36 = vadd.f32 %v3206_v30, %v5185_v54 }
 0x7e5   : > { %v3208_v40 = vpop.f32.mrf.mxu1 }
 0x7e6   : > { %3382 = vst [vmem:[%s5211_s5 + $0xd8] sm:$0xff] %v3350_v60  ;;  %v3351_v46 = vadd.f32 %v5202_v27, %v3243_v36  ;;  %v3244_v23 = vadd.f32 %v3208_v40, %v5187_v0 }
 0x7e7   : > { %v3210_v34 = vpop.f32.mrf.mxu1 }
 0x7e8   : > { %3383 = vst [vmem:[%s5211_s5 + $0xe0] sm:$0xff] %v3351_v46  ;;  %v3352_v61 = vadd.f32 %v5205_v2, %v3244_v23  ;;  %v3245_v7 = vadd.f32 %v3210_v34, %v5189_v1 }
 0x7e9   : > { %v3212_v10 = vpop.f32.mrf.mxu1 }
 0x7ea   : > { %3384 = vst [vmem:[%s5211_s5 + $0xe8] sm:$0xff] %v3352_v61  ;;  %v3353_v54 = vadd.f32 %v5202_v27, %v3245_v7  ;;  %v3246_v37 = vadd.f32 %v3212_v10, %v5191_v3 }
 0x7ec   : > { %3385 = vst [vmem:[%s5211_s5 + $0xf0] sm:$0xff] %v3353_v54  ;;  %v3354_v0 = vadd.f32 %v5205_v2, %v3246_v37 }
 0x7ee   : > { %3386 = vst [vmem:[%s5211_s5 + $0xf8] sm:$0xff] %v3354_v0 }
 0x7ef   : > { %4530 = shalt.err (!%p4527_p9)
}
 0x7f0   : > { %s4531_s10 = scalar_lea.hbm %s5308_s26, 4096  ;;  %s4535_s20 = scalar_lea.hbm %s5360_s4, 8192 }
 0x7f1   : > { %p4532_p13 = scmp.ne.s32.totalorder %s5308_s26, %s4531_s10  ;;  %p4536_p4 = scmp.lt.s32.totalorder %s5308_s26, %s5360_s4 }
 0x7f2   : > { %p4537_p8 = scmp.lt.s32.totalorder %s4535_s20, %s4531_s10 }
 0x7f3   : > { %p4533_p5 = pnand %p4532_p13, %p5376_p10 }
 0x7f4   : > { %p4538_p7 = por %p4537_p8, %p4536_p4 }
 0x7f5   : > { %p4534_p0 = pneg %p4533_p5 }
 0x7f7   : > { %p4539_p11 = pnand %p4538_p7, %p4534_p0 }
 0x7f9   : > { %4542 = shalt.err (!%p4539_p11)
}
 0x7fa   : > { %s4598_s5 = smov 256   ;;  %s4599_s7 = smov 16  }
 0x7fb   : > { %4003 = dma.vmem_to_hbm [thread:$0]  (%p5376_p10), %s5310_s8, 4096, %s5308_s26, %s3388_s19, %s4598_s5, %s4598_s5, %s4599_s7  }
 0x7fc PF: > { %s3416_s9 = sand.u32 1, %s4573_s15   ;;  %p5377_p1 = scmp.ne.s32.totalorder %s5366_s22, 0 }
 0x7fd   : > { %p5378_p2 = scmp.ge.s32.totalorder %s4585_s18, 2  ;;  %s3417_s27 = scalar_lea.sflag [#allocation6], %s3416_s9 }
 0x7ff   : > { %p4017_p6 = pnand %p5378_p2, %p5377_p1 }
 0x801   : > { %p4018_p12 = pneg %p4017_p6 }
 0x803   : > { %4568 = dma.done.wait (%p4018_p12), %s3417_s27, 4096  }
 0x804   : > { %4570 = vsyncadd (%p4018_p12), %s3417_s27, 4294963200  ;;  %p18_p3 = scmp.ge.s32.totalorder %s4697_s13, 4   ;;  %s5379_s15 = smov %s4577_s16 }
 0x805   : > { %s5380_s16 = smov %s4581_s17  ;;  %s5381_s17 = smov %s4706_s24 }
 0x806   : > { %s5382_s18 = smov %s4697_s13  ;;  %20 = sbr.rel (!%p18_p3) target bundleno = 6 (0x6), region = 89 }
 0x80b   :  { %3422 = vsyncpa [#allocation5], 1 }
 0x80c   :  { %3424 = vsyncpa [#allocation5 + $0x1], 1 }
 0x80d   :  { %3425 = vsyncpa [#allocation8], 1 }
 0x80e   :  { %3426 = vsyncpa [#allocation6], 1 }
 0x80f   :  { %3428 = vsyncpa [#allocation6 + $0x1], 1 }

</bundles_post_ra>
